<compile_context>
chip_gen: v7x
topology: tpu7x:2x2x1
jax: 0.10.0
libtpu: 0.0.40
codegen_flags: <defaults>
</compile_context>

<pallas_src>
import jax
import jax.numpy as jnp
from jax.experimental import pallas as pl
from jax.experimental.pallas import tpu as pltpu

_LANE = 128
_SUB = 8


class _SlabBuilder:
    """Packs many small 2-D f32 params into one lane-dense, sublane-aligned slab."""

    def __init__(self, width):
        self.width = width
        self.blocks = []
        self.offset = 0

    def add(self, a, pad_value=0.0):
        a = jnp.asarray(a, jnp.float32)
        if a.ndim == 1:
            a = a[None, :]
        r, c = a.shape
        assert c <= self.width, (c, self.width)
        r_pad = (-r) % _SUB
        block = jnp.full((r + r_pad, self.width), pad_value, jnp.float32)
        block = block.at[:r, :c].set(a)
        self.blocks.append(block)
        idx = (self.offset, r, c)
        self.offset += r + r_pad
        return idx

    def build(self):
        return jnp.concatenate(self.blocks, axis=0)


def _make_kernel(data_idx, conv_cfgs, post_idx, dims):
    """Build the fused TestGNN kernel; all offsets/shapes are static Python."""
    N, E, De, emb_dim = dims

    def _ld(ref, idx):
        off, r, c = idx
        return ref[off:off + r, :c]

    def kernel(data_ref, wide_ref, narrow_ref, out_ref):
        x = _ld(data_ref, data_idx["x"])       # [N, c_in0]   running activation
        ea = _ld(data_ref, data_idx["ea"])     # [E, De]
        S = _ld(data_ref, data_idx["S"])       # [E, N]  one-hot source gather
        T = _ld(data_ref, data_idx["T"])       # [N, E]  one-hot target scatter

        for cfg in conv_cfgs:
            c_out, post = cfg["c_out"], cfg["post"]
            ew1 = _ld(narrow_ref, cfg["ew1"])      # [De, De]
            eb1 = _ld(narrow_ref, cfg["eb1"])      # [1, De]
            w2s = _ld(wide_ref, cfg["w2s"])        # [c_in, De*c_out]
            b2r = _ld(narrow_ref, cfg["b2r"])      # [c_in, c_out]
            rw = _ld(narrow_ref, cfg["rw"])        # [c_in, c_out]
            bias = _ld(narrow_ref, cfg["bias"])    # [1, c_out]

            # edge feature net first Linear + ReLU (second Linear is folded
            # into the regrouped W2slab / B2r message path below)
            h = jnp.maximum(
                jnp.dot(ea, ew1, preferred_element_type=jnp.float32) + eb1, 0.0)

            # gather source node features (one-hot matmul, exact, toy size)
            xs = jnp.dot(S, x, preferred_element_type=jnp.float32)      # [E, c_in]

            # factorized per-edge matvec:
            #   msg[e, o] = sum_d h[e, d] * (xs @ W2slab)[e, d*c_out + o]
            #               + (xs @ B2r)[e, o]
            z = jnp.dot(xs, w2s, preferred_element_type=jnp.float32)    # [E, De*c_out]
            msg = jnp.dot(xs, b2r, preferred_element_type=jnp.float32)  # [E, c_out]
            for d in range(De):
                msg = msg + h[:, d:d + 1] * z[:, d * c_out:(d + 1) * c_out]

            # scatter-add to targets + root linear + bias
            aggr = jnp.dot(T, msg, preferred_element_type=jnp.float32)  # [N, c_out]
            y = aggr + jnp.dot(x, rw, preferred_element_type=jnp.float32) + bias

            if post:
                gamma = _ld(narrow_ref, cfg["gamma"])
                beta = _ld(narrow_ref, cfg["beta"])
                y = jnp.maximum(y, 0.0)        # ReLU; Dropout(0.25)=id in eval
                mu = jnp.mean(y, axis=-1, keepdims=True)
                var = jnp.mean(y * y, axis=-1, keepdims=True) - mu * mu
                var = jnp.maximum(var, 0.0)    # guard one-pass variance
                y = (y - mu) * jax.lax.rsqrt(var + 1e-5)
                y = y * gamma + beta
            x = y

        emb = x                                # [N, 128]

        # post_mp: ReLU -> Dropout(id) -> Linear(128,64) -> Dropout(id)
        #          -> Linear(64,out padded to 128) -> log_softmax
        w1 = _ld(narrow_ref, post_idx["w1"])   # [128, 64]
        b1 = _ld(narrow_ref, post_idx["b1"])   # [1, 64]
        w2 = _ld(narrow_ref, post_idx["w2"])   # [64, 128]  zero-padded lanes
        b2 = _ld(narrow_ref, post_idx["b2"])   # [1, 128]   -1e30 in padded lanes
        t = jnp.maximum(emb, 0.0)
        hp = jnp.dot(t, w1, preferred_element_type=jnp.float32) + b1
        logits = jnp.dot(hp, w2, preferred_element_type=jnp.float32) + b2
        m = jnp.max(logits, axis=-1, keepdims=True)
        lse = m + jnp.log(jnp.sum(jnp.exp(logits - m), axis=-1, keepdims=True))
        logp = logits - lse                    # padded lanes ~ -1e30, sliced off host-side

        # single lane-dense output slab: [emb | padded logp]
        out_ref[:, :emb_dim] = emb
        out_ref[:, emb_dim:] = logp

    return kernel


def test_gnn_forward(x, src, tgt, edge_attr, params):
    """Pallas TestGNN.forward (eval mode). Returns (emb, log_probs)."""
    N = x.shape[0]
    E, De = edge_attr.shape
    input_dim = params["input_dim"]
    out_dim = params["out_dim"]
    EMB = 128

    # one-hot gather/scatter selectors (built under jit; exact at toy size)
    S = jax.nn.one_hot(src, N, dtype=jnp.float32)       # [E, N]
    T = jax.nn.one_hot(tgt, N, dtype=jnp.float32).T     # [N, E]

    # -- pack per-graph data into one lane-dense slab ------------------------
    data = _SlabBuilder(_LANE)
    data_idx = {"x": data.add(x), "ea": data.add(edge_attr),
                "S": data.add(S), "T": data.add(T)}
    data_slab = data.build()

    # -- pack all parameters into two lane-dense slabs ------------------------
    dims = [(input_dim, 32, True), (32, 64, True), (64, 128, False)]
    names = ("conv1", "conv2", "conv3")
    wide = _SlabBuilder(max(De * c_out for _, c_out, _ in dims))
    narrow = _SlabBuilder(_LANE)

    conv_cfgs = []
    for (c_in, c_out, post), name in zip(dims, names):
        ew1, eb1, ew2, eb2, rw, bias, gamma, beta = params[name]
        # W2slab[c, d*c_out + o] = ew2[d, c*c_out + o]
        w2slab = jnp.transpose(ew2.reshape(De, c_in, c_out),
                               (1, 0, 2)).reshape(c_in, De * c_out)
        b2r = eb2.reshape(c_in, c_out)
        cfg = dict(c_in=c_in, c_out=c_out, post=post,
                   ew1=narrow.add(ew1), eb1=narrow.add(eb1),
                   w2s=wide.add(w2slab), b2r=narrow.add(b2r),
                   rw=narrow.add(rw), bias=narrow.add(bias))
        if post:
            cfg["gamma"] = narrow.add(gamma)
            cfg["beta"] = narrow.add(beta)
        conv_cfgs.append(cfg)

    w1, b1, w2, b2 = params["post"]
    # pad final classifier to 128 lanes; -1e30 bias keeps log_softmax exact
    w2_pad = jnp.zeros((w2.shape[0], _LANE), jnp.float32).at[:, :out_dim].set(w2)
    b2_pad = jnp.full((1, _LANE), -1e30, jnp.float32).at[:, :out_dim].set(b2)
    post_idx = dict(w1=narrow.add(w1), b1=narrow.add(b1),
                    w2=narrow.add(w2_pad), b2=narrow.add(b2_pad))

    wide_slab = wide.build()
    narrow_slab = narrow.build()

    # -- advisory cost estimate ------------------------------------------------
    flops = 0
    for c_in, c_out, _ in dims:
        flops += 2 * E * De * De            # edge net first linear
        flops += 2 * E * N * c_in           # gather (one-hot matmul)
        flops += 2 * E * c_in * De * c_out  # xs @ W2slab
        flops += 2 * E * c_in * c_out       # xs @ B2r
        flops += 2 * E * De * c_out         # h * Z multiply-adds
        flops += 2 * N * E * c_out          # scatter (one-hot matmul)
        flops += 2 * N * c_in * c_out       # root linear
    flops += 2 * N * EMB * 64 + 2 * N * 64 * _LANE
    bytes_accessed = 4 * (data_slab.size + wide_slab.size + narrow_slab.size
                          + N * (EMB + _LANE))
    cost = pl.CostEstimate(flops=int(flops), transcendentals=int(N * 131),
                           bytes_accessed=int(bytes_accessed))

    kernel = _make_kernel(data_idx, conv_cfgs, post_idx, (N, E, De, EMB))
    vmem_spec = pl.BlockSpec(memory_space=pltpu.MemorySpace.VMEM)

    out = pl.pallas_call(
        kernel,
        out_shape=jax.ShapeDtypeStruct((N, EMB + _LANE), jnp.float32),
        in_specs=[vmem_spec, vmem_spec, vmem_spec],
        out_specs=vmem_spec,
        compiler_params=pltpu.CompilerParams(vmem_limit_bytes=32 * 1024 * 1024),
        cost_estimate=cost,
    )(data_slab, wide_slab, narrow_slab)

    emb = out[:, :EMB]
    logp = out[:, EMB:EMB + out_dim]
    return emb, logp


# ---------------------------- pure-JAX reference ---------------------------
def reference_forward(x, src, tgt, ea, params):
    def nnconv(p, h, c_in, c_out, post):
        ew1, eb1, ew2, eb2, rw, b, g, bt = p
        e = jnp.maximum(ea @ ew1 + eb1, 0.0)
        wflat = e @ ew2 + eb2
        W = wflat.reshape(-1, c_in, c_out)
        xs = h[src]
        msg = jnp.einsum("ec,eco->eo", xs, W)
        aggr = jax.ops.segment_sum(msg, tgt, num_segments=h.shape[0])
        y = aggr + h @ rw + b
        if post:
            y = jnp.maximum(y, 0.0)
            mu = y.mean(-1, keepdims=True)
            var = ((y - mu) ** 2).mean(-1, keepdims=True)
            y = (y - mu) / jnp.sqrt(var + 1e-5) * g + bt
        return y

    h = nnconv(params["conv1"], x, params["input_dim"], 32, True)
    h = nnconv(params["conv2"], h, 32, 64, True)
    emb = nnconv(params["conv3"], h, 64, 128, False)
    w1, b1, w2, b2 = params["post"]
    logits = jnp.maximum(emb, 0.0) @ w1 + b1
    logits = logits @ w2 + b2
    logp = logits - jax.scipy.special.logsumexp(logits, axis=1, keepdims=True)
    return emb, logp


if __name__ == "__main__":
    N, E = 8, 16
    input_dim, output_dim, edge_dim = 4, 4, 8

    keys = iter(jax.random.split(jax.random.PRNGKey(0), 64))

    x = jax.random.normal(next(keys), (N, input_dim), jnp.float32)
    src = jax.random.randint(next(keys), (E,), 0, N)            # edge_index[0]
    tgt = jax.random.randint(next(keys), (E,), 0, N)            # edge_index[1]
    edge_attr = jax.random.normal(next(keys), (E, edge_dim), jnp.float32)

    def linear(fan_in, fan_out):
        w = jax.random.normal(next(keys), (fan_in, fan_out), jnp.float32)
        w = w / jnp.sqrt(jnp.float32(fan_in))
        b = 0.01 * jax.random.normal(next(keys), (1, fan_out), jnp.float32)
        return w, b

    def conv_params(c_in, c_out):
        ew1, eb1 = linear(edge_dim, edge_dim)                   # edge net Linear 1
        ew2, eb2 = linear(edge_dim, c_in * c_out)               # edge net Linear 2
        rw, _ = linear(c_in, c_out)                             # root weight (no bias)
        bias = 0.01 * jax.random.normal(next(keys), (1, c_out), jnp.float32)
        gamma = jnp.ones((1, c_out), jnp.float32)               # LayerNorm weight
        beta = jnp.zeros((1, c_out), jnp.float32)               # LayerNorm bias
        return (ew1, eb1, ew2, eb2, rw, bias, gamma, beta)

    w1, b1 = linear(128, 64)
    w2, b2 = linear(64, output_dim)

    params = {
        "input_dim": input_dim,
        "out_dim": output_dim,
        "conv1": conv_params(input_dim, 32),
        "conv2": conv_params(32, 64),
        "conv3": conv_params(64, 128),
        "post": (w1, b1, w2, b2),
    }

    emb, logp = test_gnn_forward(x, src, tgt, edge_attr, params)
    jax.block_until_ready((emb, logp))

    emb_ref, logp_ref = reference_forward(x, src, tgt, edge_attr, params)
    assert emb.shape == (N, 128) and logp.shape == (N, output_dim)
    assert jnp.allclose(emb, emb_ref, rtol=5e-4, atol=5e-4)
    assert jnp.allclose(logp, logp_ref, rtol=5e-4, atol=5e-4)

    print("KERNEL_OK")
</pallas_src>

<mosaic_0001>
module attributes {stable_mosaic.version = 11 : i64} {
  func.func @kernel(%arg0: memref<48x128xf32, #tpu.memory_space<vmem>>, %arg1: memref<104x1024xf32, #tpu.memory_space<vmem>>, %arg2: memref<520x128xf32, #tpu.memory_space<vmem>>, %arg3: memref<8x256xf32, #tpu.memory_space<vmem>>) attributes {dimension_semantics = [], scalar_prefetch = 0 : i64, scratch_operands = 0 : i64, tpu.core_type = #tpu.core_type<tc>} {
    %c0 = arith.constant 0 : index
    %c0_0 = arith.constant 0 : index
    %0 = vector.load %arg0[%c0, %c0_0] : memref<48x128xf32, #tpu.memory_space<vmem>>, vector<8x4xf32>
    %c8 = arith.constant 8 : index
    %c0_1 = arith.constant 0 : index
    %1 = vector.load %arg0[%c8, %c0_1] : memref<48x128xf32, #tpu.memory_space<vmem>>, vector<16x8xf32>
    %c24 = arith.constant 24 : index
    %c0_2 = arith.constant 0 : index
    %2 = vector.load %arg0[%c24, %c0_2] : memref<48x128xf32, #tpu.memory_space<vmem>>, vector<16x8xf32>
    %c40 = arith.constant 40 : index
    %c0_3 = arith.constant 0 : index
    %3 = vector.load %arg0[%c40, %c0_3] : memref<48x128xf32, #tpu.memory_space<vmem>>, vector<8x16xf32>
    %c0_4 = arith.constant 0 : index
    %c0_5 = arith.constant 0 : index
    %4 = vector.load %arg2[%c0_4, %c0_5] : memref<520x128xf32, #tpu.memory_space<vmem>>, vector<8x8xf32>
    %c8_6 = arith.constant 8 : index
    %c0_7 = arith.constant 0 : index
    %5 = vector.load %arg2[%c8_6, %c0_7] : memref<520x128xf32, #tpu.memory_space<vmem>>, vector<1x8xf32>
    %c0_8 = arith.constant 0 : index
    %c0_9 = arith.constant 0 : index
    %6 = vector.load %arg1[%c0_8, %c0_9] : memref<104x1024xf32, #tpu.memory_space<vmem>>, vector<4x256xf32>
    %c16 = arith.constant 16 : index
    %c0_10 = arith.constant 0 : index
    %7 = vector.load %arg2[%c16, %c0_10] : memref<520x128xf32, #tpu.memory_space<vmem>>, vector<4x32xf32>
    %c24_11 = arith.constant 24 : index
    %c0_12 = arith.constant 0 : index
    %8 = vector.load %arg2[%c24_11, %c0_12] : memref<520x128xf32, #tpu.memory_space<vmem>>, vector<4x32xf32>
    %c32 = arith.constant 32 : index
    %c0_13 = arith.constant 0 : index
    %9 = vector.load %arg2[%c32, %c0_13] : memref<520x128xf32, #tpu.memory_space<vmem>>, vector<1x32xf32>
    %cst = arith.constant dense<0.000000e+00> : vector<16x8xf32>
    %10 = tpu.matmul %1, %4, %cst {dimension_numbers = #tpu.dot_dimension_numbers<[1], [0], [0], [1], [0, 0, 1, 1], [], []>} : vector<16x8xf32>, vector<8x8xf32>, vector<16x8xf32> -> vector<16x8xf32>
    %11 = vector.broadcast %5 : vector<1x8xf32> to vector<16x8xf32>
    %12 = arith.addf %10, %11 : vector<16x8xf32>
    %cst_14 = arith.constant 0.000000e+00 : f32
    %13 = vector.broadcast %cst_14 : f32 to vector<16x8xf32>
    %14 = arith.maximumf %12, %13 : vector<16x8xf32>
    %cst_15 = arith.constant dense<0.000000e+00> : vector<16x4xf32>
    %15 = tpu.matmul %2, %0, %cst_15 {dimension_numbers = #tpu.dot_dimension_numbers<[1], [0], [0], [1], [0, 0, 1, 1], [], []>} : vector<16x8xf32>, vector<8x4xf32>, vector<16x4xf32> -> vector<16x4xf32>
    %cst_16 = arith.constant dense<0.000000e+00> : vector<16x256xf32>
    %16 = tpu.matmul %15, %6, %cst_16 {dimension_numbers = #tpu.dot_dimension_numbers<[1], [0], [0], [1], [0, 0, 1, 1], [], []>} : vector<16x4xf32>, vector<4x256xf32>, vector<16x256xf32> -> vector<16x256xf32>
    %cst_17 = arith.constant dense<0.000000e+00> : vector<16x32xf32>
    %17 = tpu.matmul %15, %7, %cst_17 {dimension_numbers = #tpu.dot_dimension_numbers<[1], [0], [0], [1], [0, 0, 1, 1], [], []>} : vector<16x4xf32>, vector<4x32xf32>, vector<16x32xf32> -> vector<16x32xf32>
    %18 = vector.extract_strided_slice %14 {offsets = [0, 0], sizes = [16, 1], strides = [1, 1]} : vector<16x8xf32> to vector<16x1xf32>
    %19 = vector.extract_strided_slice %16 {offsets = [0, 0], sizes = [16, 32], strides = [1, 1]} : vector<16x256xf32> to vector<16x32xf32>
    %20 = vector.broadcast %18 : vector<16x1xf32> to vector<16x32xf32>
    %21 = arith.mulf %20, %19 : vector<16x32xf32>
    %22 = arith.addf %17, %21 : vector<16x32xf32>
    %23 = vector.extract_strided_slice %14 {offsets = [0, 1], sizes = [16, 1], strides = [1, 1]} : vector<16x8xf32> to vector<16x1xf32>
    %24 = vector.extract_strided_slice %16 {offsets = [0, 32], sizes = [16, 32], strides = [1, 1]} : vector<16x256xf32> to vector<16x32xf32>
    %25 = vector.broadcast %23 : vector<16x1xf32> to vector<16x32xf32>
    %26 = arith.mulf %25, %24 : vector<16x32xf32>
    %27 = arith.addf %22, %26 : vector<16x32xf32>
    %28 = vector.extract_strided_slice %14 {offsets = [0, 2], sizes = [16, 1], strides = [1, 1]} : vector<16x8xf32> to vector<16x1xf32>
    %29 = vector.extract_strided_slice %16 {offsets = [0, 64], sizes = [16, 32], strides = [1, 1]} : vector<16x256xf32> to vector<16x32xf32>
    %30 = vector.broadcast %28 : vector<16x1xf32> to vector<16x32xf32>
    %31 = arith.mulf %30, %29 : vector<16x32xf32>
    %32 = arith.addf %27, %31 : vector<16x32xf32>
    %33 = vector.extract_strided_slice %14 {offsets = [0, 3], sizes = [16, 1], strides = [1, 1]} : vector<16x8xf32> to vector<16x1xf32>
    %34 = vector.extract_strided_slice %16 {offsets = [0, 96], sizes = [16, 32], strides = [1, 1]} : vector<16x256xf32> to vector<16x32xf32>
    %35 = vector.broadcast %33 : vector<16x1xf32> to vector<16x32xf32>
    %36 = arith.mulf %35, %34 : vector<16x32xf32>
    %37 = arith.addf %32, %36 : vector<16x32xf32>
    %38 = vector.extract_strided_slice %14 {offsets = [0, 4], sizes = [16, 1], strides = [1, 1]} : vector<16x8xf32> to vector<16x1xf32>
    %39 = vector.extract_strided_slice %16 {offsets = [0, 128], sizes = [16, 32], strides = [1, 1]} : vector<16x256xf32> to vector<16x32xf32>
    %40 = vector.broadcast %38 : vector<16x1xf32> to vector<16x32xf32>
    %41 = arith.mulf %40, %39 : vector<16x32xf32>
    %42 = arith.addf %37, %41 : vector<16x32xf32>
    %43 = vector.extract_strided_slice %14 {offsets = [0, 5], sizes = [16, 1], strides = [1, 1]} : vector<16x8xf32> to vector<16x1xf32>
    %44 = vector.extract_strided_slice %16 {offsets = [0, 160], sizes = [16, 32], strides = [1, 1]} : vector<16x256xf32> to vector<16x32xf32>
    %45 = vector.broadcast %43 : vector<16x1xf32> to vector<16x32xf32>
    %46 = arith.mulf %45, %44 : vector<16x32xf32>
    %47 = arith.addf %42, %46 : vector<16x32xf32>
    %48 = vector.extract_strided_slice %14 {offsets = [0, 6], sizes = [16, 1], strides = [1, 1]} : vector<16x8xf32> to vector<16x1xf32>
    %49 = vector.extract_strided_slice %16 {offsets = [0, 192], sizes = [16, 32], strides = [1, 1]} : vector<16x256xf32> to vector<16x32xf32>
    %50 = vector.broadcast %48 : vector<16x1xf32> to vector<16x32xf32>
    %51 = arith.mulf %50, %49 : vector<16x32xf32>
    %52 = arith.addf %47, %51 : vector<16x32xf32>
    %53 = vector.extract_strided_slice %14 {offsets = [0, 7], sizes = [16, 1], strides = [1, 1]} : vector<16x8xf32> to vector<16x1xf32>
    %54 = vector.extract_strided_slice %16 {offsets = [0, 224], sizes = [16, 32], strides = [1, 1]} : vector<16x256xf32> to vector<16x32xf32>
    %55 = vector.broadcast %53 : vector<16x1xf32> to vector<16x32xf32>
    %56 = arith.mulf %55, %54 : vector<16x32xf32>
    %57 = arith.addf %52, %56 : vector<16x32xf32>
    %cst_18 = arith.constant dense<0.000000e+00> : vector<8x32xf32>
    %58 = tpu.matmul %3, %57, %cst_18 {dimension_numbers = #tpu.dot_dimension_numbers<[1], [0], [0], [1], [0, 0, 1, 1], [], []>} : vector<8x16xf32>, vector<16x32xf32>, vector<8x32xf32> -> vector<8x32xf32>
    %cst_19 = arith.constant dense<0.000000e+00> : vector<8x32xf32>
    %59 = tpu.matmul %0, %8, %cst_19 {dimension_numbers = #tpu.dot_dimension_numbers<[1], [0], [0], [1], [0, 0, 1, 1], [], []>} : vector<8x4xf32>, vector<4x32xf32>, vector<8x32xf32> -> vector<8x32xf32>
    %60 = arith.addf %58, %59 : vector<8x32xf32>
    %61 = vector.broadcast %9 : vector<1x32xf32> to vector<8x32xf32>
    %62 = arith.addf %60, %61 : vector<8x32xf32>
    %c40_20 = arith.constant 40 : index
    %c0_21 = arith.constant 0 : index
    %63 = vector.load %arg2[%c40_20, %c0_21] : memref<520x128xf32, #tpu.memory_space<vmem>>, vector<1x32xf32>
    %c48 = arith.constant 48 : index
    %c0_22 = arith.constant 0 : index
    %64 = vector.load %arg2[%c48, %c0_22] : memref<520x128xf32, #tpu.memory_space<vmem>>, vector<1x32xf32>
    %cst_23 = arith.constant 0.000000e+00 : f32
    %65 = vector.broadcast %cst_23 : f32 to vector<8x32xf32>
    %66 = arith.maximumf %62, %65 : vector<8x32xf32>
    %cst_24 = arith.constant dense<0.000000e+00> : vector<8xf32>
    %67 = vector.multi_reduction <add>, %66, %cst_24 [1] : vector<8x32xf32> to vector<8xf32>
    %68 = vector.shape_cast %67 : vector<8xf32> to vector<8x1xf32>
    %cst_25 = arith.constant 3.200000e+01 : f32
    %69 = vector.broadcast %cst_25 : f32 to vector<8x1xf32>
    %70 = arith.divf %68, %69 : vector<8x1xf32>
    %71 = arith.mulf %66, %66 : vector<8x32xf32>
    %cst_26 = arith.constant dense<0.000000e+00> : vector<8xf32>
    %72 = vector.multi_reduction <add>, %71, %cst_26 [1] : vector<8x32xf32> to vector<8xf32>
    %73 = vector.shape_cast %72 : vector<8xf32> to vector<8x1xf32>
    %cst_27 = arith.constant 3.200000e+01 : f32
    %74 = vector.broadcast %cst_27 : f32 to vector<8x1xf32>
    %75 = arith.divf %73, %74 : vector<8x1xf32>
    %76 = arith.mulf %70, %70 : vector<8x1xf32>
    %77 = arith.subf %75, %76 : vector<8x1xf32>
    %cst_28 = arith.constant 0.000000e+00 : f32
    %78 = vector.broadcast %cst_28 : f32 to vector<8x1xf32>
    %79 = arith.maximumf %77, %78 : vector<8x1xf32>
    %80 = vector.broadcast %70 : vector<8x1xf32> to vector<8x32xf32>
    %81 = arith.subf %66, %80 : vector<8x32xf32>
    %cst_29 = arith.constant 9.99999974E-6 : f32
    %82 = vector.broadcast %cst_29 : f32 to vector<8x1xf32>
    %83 = arith.addf %79, %82 : vector<8x1xf32>
    %84 = math.rsqrt %83 : vector<8x1xf32>
    %85 = vector.broadcast %84 : vector<8x1xf32> to vector<8x32xf32>
    %86 = arith.mulf %81, %85 : vector<8x32xf32>
    %87 = vector.broadcast %63 : vector<1x32xf32> to vector<8x32xf32>
    %88 = arith.mulf %86, %87 : vector<8x32xf32>
    %89 = vector.broadcast %64 : vector<1x32xf32> to vector<8x32xf32>
    %90 = arith.addf %88, %89 : vector<8x32xf32>
    %c56 = arith.constant 56 : index
    %c0_30 = arith.constant 0 : index
    %91 = vector.load %arg2[%c56, %c0_30] : memref<520x128xf32, #tpu.memory_space<vmem>>, vector<8x8xf32>
    %c64 = arith.constant 64 : index
    %c0_31 = arith.constant 0 : index
    %92 = vector.load %arg2[%c64, %c0_31] : memref<520x128xf32, #tpu.memory_space<vmem>>, vector<1x8xf32>
    %c8_32 = arith.constant 8 : index
    %c0_33 = arith.constant 0 : index
    %93 = vector.load %arg1[%c8_32, %c0_33] : memref<104x1024xf32, #tpu.memory_space<vmem>>, vector<32x512xf32>
    %c72 = arith.constant 72 : index
    %c0_34 = arith.constant 0 : index
    %94 = vector.load %arg2[%c72, %c0_34] : memref<520x128xf32, #tpu.memory_space<vmem>>, vector<32x64xf32>
    %c104 = arith.constant 104 : index
    %c0_35 = arith.constant 0 : index
    %95 = vector.load %arg2[%c104, %c0_35] : memref<520x128xf32, #tpu.memory_space<vmem>>, vector<32x64xf32>
    %c136 = arith.constant 136 : index
    %c0_36 = arith.constant 0 : index
    %96 = vector.load %arg2[%c136, %c0_36] : memref<520x128xf32, #tpu.memory_space<vmem>>, vector<1x64xf32>
    %cst_37 = arith.constant dense<0.000000e+00> : vector<16x8xf32>
    %97 = tpu.matmul %1, %91, %cst_37 {dimension_numbers = #tpu.dot_dimension_numbers<[1], [0], [0], [1], [0, 0, 1, 1], [], []>} : vector<16x8xf32>, vector<8x8xf32>, vector<16x8xf32> -> vector<16x8xf32>
    %98 = vector.broadcast %92 : vector<1x8xf32> to vector<16x8xf32>
    %99 = arith.addf %97, %98 : vector<16x8xf32>
    %cst_38 = arith.constant 0.000000e+00 : f32
    %100 = vector.broadcast %cst_38 : f32 to vector<16x8xf32>
    %101 = arith.maximumf %99, %100 : vector<16x8xf32>
    %cst_39 = arith.constant dense<0.000000e+00> : vector<16x32xf32>
    %102 = tpu.matmul %2, %90, %cst_39 {dimension_numbers = #tpu.dot_dimension_numbers<[1], [0], [0], [1], [0, 0, 1, 1], [], []>} : vector<16x8xf32>, vector<8x32xf32>, vector<16x32xf32> -> vector<16x32xf32>
    %cst_40 = arith.constant dense<0.000000e+00> : vector<16x512xf32>
    %103 = tpu.matmul %102, %93, %cst_40 {dimension_numbers = #tpu.dot_dimension_numbers<[1], [0], [0], [1], [0, 0, 1, 1], [], []>} : vector<16x32xf32>, vector<32x512xf32>, vector<16x512xf32> -> vector<16x512xf32>
    %cst_41 = arith.constant dense<0.000000e+00> : vector<16x64xf32>
    %104 = tpu.matmul %102, %94, %cst_41 {dimension_numbers = #tpu.dot_dimension_numbers<[1], [0], [0], [1], [0, 0, 1, 1], [], []>} : vector<16x32xf32>, vector<32x64xf32>, vector<16x64xf32> -> vector<16x64xf32>
    %105 = vector.extract_strided_slice %101 {offsets = [0, 0], sizes = [16, 1], strides = [1, 1]} : vector<16x8xf32> to vector<16x1xf32>
    %106 = vector.extract_strided_slice %103 {offsets = [0, 0], sizes = [16, 64], strides = [1, 1]} : vector<16x512xf32> to vector<16x64xf32>
    %107 = vector.broadcast %105 : vector<16x1xf32> to vector<16x64xf32>
    %108 = arith.mulf %107, %106 : vector<16x64xf32>
    %109 = arith.addf %104, %108 : vector<16x64xf32>
    %110 = vector.extract_strided_slice %101 {offsets = [0, 1], sizes = [16, 1], strides = [1, 1]} : vector<16x8xf32> to vector<16x1xf32>
    %111 = vector.extract_strided_slice %103 {offsets = [0, 64], sizes = [16, 64], strides = [1, 1]} : vector<16x512xf32> to vector<16x64xf32>
    %112 = vector.broadcast %110 : vector<16x1xf32> to vector<16x64xf32>
    %113 = arith.mulf %112, %111 : vector<16x64xf32>
    %114 = arith.addf %109, %113 : vector<16x64xf32>
    %115 = vector.extract_strided_slice %101 {offsets = [0, 2], sizes = [16, 1], strides = [1, 1]} : vector<16x8xf32> to vector<16x1xf32>
    %116 = vector.extract_strided_slice %103 {offsets = [0, 128], sizes = [16, 64], strides = [1, 1]} : vector<16x512xf32> to vector<16x64xf32>
    %117 = vector.broadcast %115 : vector<16x1xf32> to vector<16x64xf32>
    %118 = arith.mulf %117, %116 : vector<16x64xf32>
    %119 = arith.addf %114, %118 : vector<16x64xf32>
    %120 = vector.extract_strided_slice %101 {offsets = [0, 3], sizes = [16, 1], strides = [1, 1]} : vector<16x8xf32> to vector<16x1xf32>
    %121 = vector.extract_strided_slice %103 {offsets = [0, 192], sizes = [16, 64], strides = [1, 1]} : vector<16x512xf32> to vector<16x64xf32>
    %122 = vector.broadcast %120 : vector<16x1xf32> to vector<16x64xf32>
    %123 = arith.mulf %122, %121 : vector<16x64xf32>
    %124 = arith.addf %119, %123 : vector<16x64xf32>
    %125 = vector.extract_strided_slice %101 {offsets = [0, 4], sizes = [16, 1], strides = [1, 1]} : vector<16x8xf32> to vector<16x1xf32>
    %126 = vector.extract_strided_slice %103 {offsets = [0, 256], sizes = [16, 64], strides = [1, 1]} : vector<16x512xf32> to vector<16x64xf32>
    %127 = vector.broadcast %125 : vector<16x1xf32> to vector<16x64xf32>
    %128 = arith.mulf %127, %126 : vector<16x64xf32>
    %129 = arith.addf %124, %128 : vector<16x64xf32>
    %130 = vector.extract_strided_slice %101 {offsets = [0, 5], sizes = [16, 1], strides = [1, 1]} : vector<16x8xf32> to vector<16x1xf32>
    %131 = vector.extract_strided_slice %103 {offsets = [0, 320], sizes = [16, 64], strides = [1, 1]} : vector<16x512xf32> to vector<16x64xf32>
    %132 = vector.broadcast %130 : vector<16x1xf32> to vector<16x64xf32>
    %133 = arith.mulf %132, %131 : vector<16x64xf32>
    %134 = arith.addf %129, %133 : vector<16x64xf32>
    %135 = vector.extract_strided_slice %101 {offsets = [0, 6], sizes = [16, 1], strides = [1, 1]} : vector<16x8xf32> to vector<16x1xf32>
    %136 = vector.extract_strided_slice %103 {offsets = [0, 384], sizes = [16, 64], strides = [1, 1]} : vector<16x512xf32> to vector<16x64xf32>
    %137 = vector.broadcast %135 : vector<16x1xf32> to vector<16x64xf32>
    %138 = arith.mulf %137, %136 : vector<16x64xf32>
    %139 = arith.addf %134, %138 : vector<16x64xf32>
    %140 = vector.extract_strided_slice %101 {offsets = [0, 7], sizes = [16, 1], strides = [1, 1]} : vector<16x8xf32> to vector<16x1xf32>
    %141 = vector.extract_strided_slice %103 {offsets = [0, 448], sizes = [16, 64], strides = [1, 1]} : vector<16x512xf32> to vector<16x64xf32>
    %142 = vector.broadcast %140 : vector<16x1xf32> to vector<16x64xf32>
    %143 = arith.mulf %142, %141 : vector<16x64xf32>
    %144 = arith.addf %139, %143 : vector<16x64xf32>
    %cst_42 = arith.constant dense<0.000000e+00> : vector<8x64xf32>
    %145 = tpu.matmul %3, %144, %cst_42 {dimension_numbers = #tpu.dot_dimension_numbers<[1], [0], [0], [1], [0, 0, 1, 1], [], []>} : vector<8x16xf32>, vector<16x64xf32>, vector<8x64xf32> -> vector<8x64xf32>
    %cst_43 = arith.constant dense<0.000000e+00> : vector<8x64xf32>
    %146 = tpu.matmul %90, %95, %cst_43 {dimension_numbers = #tpu.dot_dimension_numbers<[1], [0], [0], [1], [0, 0, 1, 1], [], []>} : vector<8x32xf32>, vector<32x64xf32>, vector<8x64xf32> -> vector<8x64xf32>
    %147 = arith.addf %145, %146 : vector<8x64xf32>
    %148 = vector.broadcast %96 : vector<1x64xf32> to vector<8x64xf32>
    %149 = arith.addf %147, %148 : vector<8x64xf32>
    %c144 = arith.constant 144 : index
    %c0_44 = arith.constant 0 : index
    %150 = vector.load %arg2[%c144, %c0_44] : memref<520x128xf32, #tpu.memory_space<vmem>>, vector<1x64xf32>
    %c152 = arith.constant 152 : index
    %c0_45 = arith.constant 0 : index
    %151 = vector.load %arg2[%c152, %c0_45] : memref<520x128xf32, #tpu.memory_space<vmem>>, vector<1x64xf32>
    %cst_46 = arith.constant 0.000000e+00 : f32
    %152 = vector.broadcast %cst_46 : f32 to vector<8x64xf32>
    %153 = arith.maximumf %149, %152 : vector<8x64xf32>
    %cst_47 = arith.constant dense<0.000000e+00> : vector<8xf32>
    %154 = vector.multi_reduction <add>, %153, %cst_47 [1] : vector<8x64xf32> to vector<8xf32>
    %155 = vector.shape_cast %154 : vector<8xf32> to vector<8x1xf32>
    %cst_48 = arith.constant 6.400000e+01 : f32
    %156 = vector.broadcast %cst_48 : f32 to vector<8x1xf32>
    %157 = arith.divf %155, %156 : vector<8x1xf32>
    %158 = arith.mulf %153, %153 : vector<8x64xf32>
    %cst_49 = arith.constant dense<0.000000e+00> : vector<8xf32>
    %159 = vector.multi_reduction <add>, %158, %cst_49 [1] : vector<8x64xf32> to vector<8xf32>
    %160 = vector.shape_cast %159 : vector<8xf32> to vector<8x1xf32>
    %cst_50 = arith.constant 6.400000e+01 : f32
    %161 = vector.broadcast %cst_50 : f32 to vector<8x1xf32>
    %162 = arith.divf %160, %161 : vector<8x1xf32>
    %163 = arith.mulf %157, %157 : vector<8x1xf32>
    %164 = arith.subf %162, %163 : vector<8x1xf32>
    %cst_51 = arith.constant 0.000000e+00 : f32
    %165 = vector.broadcast %cst_51 : f32 to vector<8x1xf32>
    %166 = arith.maximumf %164, %165 : vector<8x1xf32>
    %167 = vector.broadcast %157 : vector<8x1xf32> to vector<8x64xf32>
    %168 = arith.subf %153, %167 : vector<8x64xf32>
    %cst_52 = arith.constant 9.99999974E-6 : f32
    %169 = vector.broadcast %cst_52 : f32 to vector<8x1xf32>
    %170 = arith.addf %166, %169 : vector<8x1xf32>
    %171 = math.rsqrt %170 : vector<8x1xf32>
    %172 = vector.broadcast %171 : vector<8x1xf32> to vector<8x64xf32>
    %173 = arith.mulf %168, %172 : vector<8x64xf32>
    %174 = vector.broadcast %150 : vector<1x64xf32> to vector<8x64xf32>
    %175 = arith.mulf %173, %174 : vector<8x64xf32>
    %176 = vector.broadcast %151 : vector<1x64xf32> to vector<8x64xf32>
    %177 = arith.addf %175, %176 : vector<8x64xf32>
    %c160 = arith.constant 160 : index
    %c0_53 = arith.constant 0 : index
    %178 = vector.load %arg2[%c160, %c0_53] : memref<520x128xf32, #tpu.memory_space<vmem>>, vector<8x8xf32>
    %c168 = arith.constant 168 : index
    %c0_54 = arith.constant 0 : index
    %179 = vector.load %arg2[%c168, %c0_54] : memref<520x128xf32, #tpu.memory_space<vmem>>, vector<1x8xf32>
    %c40_55 = arith.constant 40 : index
    %c0_56 = arith.constant 0 : index
    %180 = vector.load %arg1[%c40_55, %c0_56] : memref<104x1024xf32, #tpu.memory_space<vmem>>, vector<64x1024xf32>
    %c176 = arith.constant 176 : index
    %c0_57 = arith.constant 0 : index
    %181 = vector.load %arg2[%c176, %c0_57] : memref<520x128xf32, #tpu.memory_space<vmem>>, vector<64x128xf32>
    %c240 = arith.constant 240 : index
    %c0_58 = arith.constant 0 : index
    %182 = vector.load %arg2[%c240, %c0_58] : memref<520x128xf32, #tpu.memory_space<vmem>>, vector<64x128xf32>
    %c304 = arith.constant 304 : index
    %c0_59 = arith.constant 0 : index
    %183 = vector.load %arg2[%c304, %c0_59] : memref<520x128xf32, #tpu.memory_space<vmem>>, vector<1x128xf32>
    %cst_60 = arith.constant dense<0.000000e+00> : vector<16x8xf32>
    %184 = tpu.matmul %1, %178, %cst_60 {dimension_numbers = #tpu.dot_dimension_numbers<[1], [0], [0], [1], [0, 0, 1, 1], [], []>} : vector<16x8xf32>, vector<8x8xf32>, vector<16x8xf32> -> vector<16x8xf32>
    %185 = vector.broadcast %179 : vector<1x8xf32> to vector<16x8xf32>
    %186 = arith.addf %184, %185 : vector<16x8xf32>
    %cst_61 = arith.constant 0.000000e+00 : f32
    %187 = vector.broadcast %cst_61 : f32 to vector<16x8xf32>
    %188 = arith.maximumf %186, %187 : vector<16x8xf32>
    %cst_62 = arith.constant dense<0.000000e+00> : vector<16x64xf32>
    %189 = tpu.matmul %2, %177, %cst_62 {dimension_numbers = #tpu.dot_dimension_numbers<[1], [0], [0], [1], [0, 0, 1, 1], [], []>} : vector<16x8xf32>, vector<8x64xf32>, vector<16x64xf32> -> vector<16x64xf32>
    %cst_63 = arith.constant dense<0.000000e+00> : vector<16x1024xf32>
    %190 = tpu.matmul %189, %180, %cst_63 {dimension_numbers = #tpu.dot_dimension_numbers<[1], [0], [0], [1], [0, 0, 1, 1], [], []>} : vector<16x64xf32>, vector<64x1024xf32>, vector<16x1024xf32> -> vector<16x1024xf32>
    %cst_64 = arith.constant dense<0.000000e+00> : vector<16x128xf32>
    %191 = tpu.matmul %189, %181, %cst_64 {dimension_numbers = #tpu.dot_dimension_numbers<[1], [0], [0], [1], [0, 0, 1, 1], [], []>} : vector<16x64xf32>, vector<64x128xf32>, vector<16x128xf32> -> vector<16x128xf32>
    %192 = vector.extract_strided_slice %188 {offsets = [0, 0], sizes = [16, 1], strides = [1, 1]} : vector<16x8xf32> to vector<16x1xf32>
    %193 = vector.extract_strided_slice %190 {offsets = [0, 0], sizes = [16, 128], strides = [1, 1]} : vector<16x1024xf32> to vector<16x128xf32>
    %194 = vector.broadcast %192 : vector<16x1xf32> to vector<16x128xf32>
    %195 = arith.mulf %194, %193 : vector<16x128xf32>
    %196 = arith.addf %191, %195 : vector<16x128xf32>
    %197 = vector.extract_strided_slice %188 {offsets = [0, 1], sizes = [16, 1], strides = [1, 1]} : vector<16x8xf32> to vector<16x1xf32>
    %198 = vector.extract_strided_slice %190 {offsets = [0, 128], sizes = [16, 128], strides = [1, 1]} : vector<16x1024xf32> to vector<16x128xf32>
    %199 = vector.broadcast %197 : vector<16x1xf32> to vector<16x128xf32>
    %200 = arith.mulf %199, %198 : vector<16x128xf32>
    %201 = arith.addf %196, %200 : vector<16x128xf32>
    %202 = vector.extract_strided_slice %188 {offsets = [0, 2], sizes = [16, 1], strides = [1, 1]} : vector<16x8xf32> to vector<16x1xf32>
    %203 = vector.extract_strided_slice %190 {offsets = [0, 256], sizes = [16, 128], strides = [1, 1]} : vector<16x1024xf32> to vector<16x128xf32>
    %204 = vector.broadcast %202 : vector<16x1xf32> to vector<16x128xf32>
    %205 = arith.mulf %204, %203 : vector<16x128xf32>
    %206 = arith.addf %201, %205 : vector<16x128xf32>
    %207 = vector.extract_strided_slice %188 {offsets = [0, 3], sizes = [16, 1], strides = [1, 1]} : vector<16x8xf32> to vector<16x1xf32>
    %208 = vector.extract_strided_slice %190 {offsets = [0, 384], sizes = [16, 128], strides = [1, 1]} : vector<16x1024xf32> to vector<16x128xf32>
    %209 = vector.broadcast %207 : vector<16x1xf32> to vector<16x128xf32>
    %210 = arith.mulf %209, %208 : vector<16x128xf32>
    %211 = arith.addf %206, %210 : vector<16x128xf32>
    %212 = vector.extract_strided_slice %188 {offsets = [0, 4], sizes = [16, 1], strides = [1, 1]} : vector<16x8xf32> to vector<16x1xf32>
    %213 = vector.extract_strided_slice %190 {offsets = [0, 512], sizes = [16, 128], strides = [1, 1]} : vector<16x1024xf32> to vector<16x128xf32>
    %214 = vector.broadcast %212 : vector<16x1xf32> to vector<16x128xf32>
    %215 = arith.mulf %214, %213 : vector<16x128xf32>
    %216 = arith.addf %211, %215 : vector<16x128xf32>
    %217 = vector.extract_strided_slice %188 {offsets = [0, 5], sizes = [16, 1], strides = [1, 1]} : vector<16x8xf32> to vector<16x1xf32>
    %218 = vector.extract_strided_slice %190 {offsets = [0, 640], sizes = [16, 128], strides = [1, 1]} : vector<16x1024xf32> to vector<16x128xf32>
    %219 = vector.broadcast %217 : vector<16x1xf32> to vector<16x128xf32>
    %220 = arith.mulf %219, %218 : vector<16x128xf32>
    %221 = arith.addf %216, %220 : vector<16x128xf32>
    %222 = vector.extract_strided_slice %188 {offsets = [0, 6], sizes = [16, 1], strides = [1, 1]} : vector<16x8xf32> to vector<16x1xf32>
    %223 = vector.extract_strided_slice %190 {offsets = [0, 768], sizes = [16, 128], strides = [1, 1]} : vector<16x1024xf32> to vector<16x128xf32>
    %224 = vector.broadcast %222 : vector<16x1xf32> to vector<16x128xf32>
    %225 = arith.mulf %224, %223 : vector<16x128xf32>
    %226 = arith.addf %221, %225 : vector<16x128xf32>
    %227 = vector.extract_strided_slice %188 {offsets = [0, 7], sizes = [16, 1], strides = [1, 1]} : vector<16x8xf32> to vector<16x1xf32>
    %228 = vector.extract_strided_slice %190 {offsets = [0, 896], sizes = [16, 128], strides = [1, 1]} : vector<16x1024xf32> to vector<16x128xf32>
    %229 = vector.broadcast %227 : vector<16x1xf32> to vector<16x128xf32>
    %230 = arith.mulf %229, %228 : vector<16x128xf32>
    %231 = arith.addf %226, %230 : vector<16x128xf32>
    %cst_65 = arith.constant dense<0.000000e+00> : vector<8x128xf32>
    %232 = tpu.matmul %3, %231, %cst_65 {dimension_numbers = #tpu.dot_dimension_numbers<[1], [0], [0], [1], [0, 0, 1, 1], [], []>} : vector<8x16xf32>, vector<16x128xf32>, vector<8x128xf32> -> vector<8x128xf32>
    %cst_66 = arith.constant dense<0.000000e+00> : vector<8x128xf32>
    %233 = tpu.matmul %177, %182, %cst_66 {dimension_numbers = #tpu.dot_dimension_numbers<[1], [0], [0], [1], [0, 0, 1, 1], [], []>} : vector<8x64xf32>, vector<64x128xf32>, vector<8x128xf32> -> vector<8x128xf32>
    %234 = arith.addf %232, %233 : vector<8x128xf32>
    %235 = vector.broadcast %183 : vector<1x128xf32> to vector<8x128xf32>
    %236 = arith.addf %234, %235 : vector<8x128xf32>
    %c312 = arith.constant 312 : index
    %c0_67 = arith.constant 0 : index
    %237 = vector.load %arg2[%c312, %c0_67] : memref<520x128xf32, #tpu.memory_space<vmem>>, vector<128x64xf32>
    %c440 = arith.constant 440 : index
    %c0_68 = arith.constant 0 : index
    %238 = vector.load %arg2[%c440, %c0_68] : memref<520x128xf32, #tpu.memory_space<vmem>>, vector<1x64xf32>
    %c448 = arith.constant 448 : index
    %c0_69 = arith.constant 0 : index
    %239 = vector.load %arg2[%c448, %c0_69] : memref<520x128xf32, #tpu.memory_space<vmem>>, vector<64x128xf32>
    %c512 = arith.constant 512 : index
    %c0_70 = arith.constant 0 : index
    %240 = vector.load %arg2[%c512, %c0_70] : memref<520x128xf32, #tpu.memory_space<vmem>>, vector<1x128xf32>
    %cst_71 = arith.constant 0.000000e+00 : f32
    %241 = vector.broadcast %cst_71 : f32 to vector<8x128xf32>
    %242 = arith.maximumf %236, %241 : vector<8x128xf32>
    %cst_72 = arith.constant dense<0.000000e+00> : vector<8x64xf32>
    %243 = tpu.matmul %242, %237, %cst_72 {dimension_numbers = #tpu.dot_dimension_numbers<[1], [0], [0], [1], [0, 0, 1, 1], [], []>} : vector<8x128xf32>, vector<128x64xf32>, vector<8x64xf32> -> vector<8x64xf32>
    %244 = vector.broadcast %238 : vector<1x64xf32> to vector<8x64xf32>
    %245 = arith.addf %243, %244 : vector<8x64xf32>
    %cst_73 = arith.constant dense<0.000000e+00> : vector<8x128xf32>
    %246 = tpu.matmul %245, %239, %cst_73 {dimension_numbers = #tpu.dot_dimension_numbers<[1], [0], [0], [1], [0, 0, 1, 1], [], []>} : vector<8x64xf32>, vector<64x128xf32>, vector<8x128xf32> -> vector<8x128xf32>
    %247 = vector.broadcast %240 : vector<1x128xf32> to vector<8x128xf32>
    %248 = arith.addf %246, %247 : vector<8x128xf32>
    %cst_74 = arith.constant dense<0xFF800000> : vector<8xf32>
    %249 = vector.multi_reduction <maximumf>, %248, %cst_74 [1] : vector<8x128xf32> to vector<8xf32>
    %250 = vector.shape_cast %249 : vector<8xf32> to vector<8x1xf32>
    %251 = vector.broadcast %250 : vector<8x1xf32> to vector<8x128xf32>
    %252 = arith.subf %248, %251 : vector<8x128xf32>
    %253 = math.exp %252 : vector<8x128xf32>
    %cst_75 = arith.constant dense<0.000000e+00> : vector<8xf32>
    %254 = vector.multi_reduction <add>, %253, %cst_75 [1] : vector<8x128xf32> to vector<8xf32>
    %255 = vector.shape_cast %254 : vector<8xf32> to vector<8x1xf32>
    %256 = math.log %255 : vector<8x1xf32>
    %257 = arith.addf %250, %256 : vector<8x1xf32>
    %258 = vector.broadcast %257 : vector<8x1xf32> to vector<8x128xf32>
    %259 = arith.subf %248, %258 : vector<8x128xf32>
    %c0_76 = arith.constant 0 : index
    %c0_77 = arith.constant 0 : index
    %260 = vector.load %arg3[%c0_76, %c0_77] : memref<8x256xf32, #tpu.memory_space<vmem>>, vector<8x128xf32>
    tpu.vector_store %arg3[%c0_76, %c0_77], %236 {strides = array<i32>} : memref<8x256xf32, #tpu.memory_space<vmem>>, vector<8x128xf32>,
    %c0_78 = arith.constant 0 : index
    %c128 = arith.constant 128 : index
    %261 = vector.load %arg3[%c0_78, %c128] : memref<8x256xf32, #tpu.memory_space<vmem>>, vector<8x128xf32>
    tpu.vector_store %arg3[%c0_78, %c128], %259 {strides = array<i32>} : memref<8x256xf32, #tpu.memory_space<vmem>>, vector<8x128xf32>,
    return
  }
}

</mosaic_0001>

<bundles_post_ra>
// kernel: tpu_custom_call.1
= control target key start
LH: loop header
LB: loop body
LE: loop exit
PB: predicated region body
PF: predicated region fallthrough
CT: control target
= control target key end

     0   :  { %8 = vsyncpa [#allocation3], 0  ;;  %s3491_s0 = inlined_call_operand.hbm [shape: f32[48,128], index: 0, kind: input, shape index: {}]   ;;  %s3492_s1 = inlined_call_operand.hbm [shape: f32[104,1024], index: 1, kind: input, shape index: {}]   ;;  %s3493_s2 = inlined_call_operand.hbm [shape: f32[520,128], index: 2, kind: input, shape index: {}]   ;;  %s3494_s3 = inlined_call_operand.hbm [shape: f32[8,256], index: 3, kind: output, shape index: {}]  }
   0x1   :  { %9 = vsyncpa [#allocation6], 0 }
   0x2   :  { %10 = vsyncpa [#allocation4], 0  ;;  %s3190_s12 = smov [#allocation5]   ;;  %s3096_s16 = scalar_lea.hbm %s3492_s1, 13312 }
   0x3   :  { %s28_s13 = sshll.u32 %s3190_s12, 4  ;;  %p3097_p0 = scmp.ne.s32.totalorder %s3492_s1, %s3096_s16  ;;  %s29_s13 = int_to_ptr.vmem [resolvable:$true] %s28_s13 }
   0x4   :  { %p3100_p1 = scmp.lt.u32.totalorder %s3096_s16, %s3492_s1 }
   0x6   :  { %p3102_p2 = pnand %p3100_p1, %p3097_p0 }
   0x8   :  { %3105 = shalt.err (!%p3102_p2)
}
   0x9   :  { %s3106_s21 = scalar_lea.vmem %s29_s13, 13312  ;;  %p3111_p4 = scmp.lt.s32.totalorder %s29_s13, %s29_s13 }
   0xa   :  { %p3107_p3 = scmp.ne.s32.totalorder %s29_s13, %s3106_s21  ;;  %p3112_p5 = scmp.lt.s32.totalorder %s3106_s21, %s3106_s21 }
   0xc   :  { %p3113_p6 = por %p3112_p5, %p3111_p4 }
   0xe   :  { %p3114_p7 = pnand %p3113_p6, %p3107_p3 }
  0x10   :  { %3117 = shalt.err (!%p3114_p7)
}
  0x11   :  { %s3191_s22 = smov 1024   ;;  %s3192_s23 = smov 64  }
  0x12   :  { %34 = dma.hbm_to_vmem [thread:$0]  %s3492_s1, 13312, %s29_s13, [#allocation6], %s3191_s22, %s3191_s22, %s3192_s23  }
  0x13   :  { %s3193_s26 = smov [#allocation2]   ;;  %s3118_s30 = scalar_lea.hbm %s3491_s0, 768 }
  0x14   :  { %s16_s27 = sshll.u32 %s3193_s26, 4  ;;  %p3119_p8 = scmp.ne.s32.totalorder %s3491_s0, %s3118_s30  ;;  %s17_s27 = int_to_ptr.vmem [resolvable:$true] %s16_s27 }
  0x15   :  { %p3122_p9 = scmp.lt.u32.totalorder %s3118_s30, %s3491_s0 }
  0x17   :  { %p3124_p10 = pnand %p3122_p9, %p3119_p8 }
  0x19   :  { %3127 = shalt.err (!%p3124_p10)
}
  0x1a   :  { %s3128_s8 = scalar_lea.vmem %s17_s27, 768  ;;  %p3133_p12 = scmp.lt.s32.totalorder %s17_s27, %s17_s27 }
  0x1b   :  { %p3129_p11 = scmp.ne.s32.totalorder %s17_s27, %s3128_s8  ;;  %p3134_p13 = scmp.lt.s32.totalorder %s3128_s8, %s3128_s8 }
  0x1d   :  { %p3135_p0 = por %p3134_p13, %p3133_p12 }
  0x1f   :  { %p3136_p1 = pnand %p3135_p0, %p3129_p11 }
  0x21   :  { %3139 = shalt.err (!%p3136_p1)
}
  0x22   :  { %s3194_s1 = smov 128   ;;  %s3195_s9 = smov 8  }
  0x23   :  { %22 = dma.hbm_to_vmem [thread:$0]  %s3491_s0, 768, %s17_s27, [#allocation3], %s3194_s1, %s3194_s1, %s3195_s9  }
  0x24   :  { %s3196_s12 = smov [#allocation7]   ;;  %s3140_s16 = scalar_lea.hbm %s3493_s2, 8320 }
  0x25   :  { %s40_s13 = sshll.u32 %s3196_s12, 4  ;;  %p3141_p2 = scmp.ne.s32.totalorder %s3493_s2, %s3140_s16  ;;  %s41_s13 = int_to_ptr.vmem [resolvable:$true] %s40_s13 }
  0x26   :  { %p3144_p3 = scmp.lt.u32.totalorder %s3140_s16, %s3493_s2 }
  0x28   :  { %p3146_p4 = pnand %p3144_p3, %p3141_p2 }
  0x2a   :  { %3149 = shalt.err (!%p3146_p4)
}
  0x2b   :  { %s3150_s21 = scalar_lea.vmem %s41_s13, 8320  ;;  %p3155_p6 = scmp.lt.s32.totalorder %s41_s13, %s41_s13 }
  0x2c   :  { %p3151_p5 = scmp.ne.s32.totalorder %s41_s13, %s3150_s21  ;;  %p3156_p7 = scmp.lt.s32.totalorder %s3150_s21, %s3150_s21 }
  0x2e   :  { %p3157_p8 = por %p3156_p7, %p3155_p6 }
  0x30   :  { %p3158_p9 = pnand %p3157_p8, %p3151_p5 }
  0x32   :  { %3161 = shalt.err (!%p3158_p9)
}
  0x33   :  { %46 = dma.hbm_to_vmem [thread:$0]  %s3493_s2, 8320, %s41_s13, [#allocation6], %s3194_s1, %s3194_s1, %s3195_s9  }
  0x34   :  { %3184 = dma.done.wait [#allocation3], 768  }
  0x35   :  { %3185 = vsyncadd [#allocation3], 4294966528 }
  0x36   :  { %3186 = dma.done.wait [#allocation6], 21632  }
  0x37   :  { %3187 = vsyncadd [#allocation6], 4294945664  ;;  %vm73_vm0 = vcmask 64512   ;;  %v62_v0 = vld [vmem:[#allocation7] sm:$0xff]  ;;  %v3268_v1 = vld [vmem:[#allocation2 + $0x8] sm:$0xff]  ;;  %vm245_vm1 = vcmask 1043456  }
  0x38   :  { %v3270_v2 = vld [vmem:[#allocation2 + $0x10] sm:$0xff]  ;;  %2684 = vmatprep.subr.mxu0 %v62_v0  ;;  %2686 = vmatprep.mubr.msk.f32.mxu0 %vm73_vm0, %v3268_v1  ;;  %v3274_v3 = vld [vmem:[#allocation2] sm:$0xff]  ;;  %v3276_v4 = vld [vmem:[#allocation2 + $0x18] sm:$0xff]  ;;  %v3197_v7 = vmov 2   ;;  %v3198_v8 = vmov 1   ;;  %v3199_v11 = vmov 0.0  }
  0x39   :  { %2685 = vmatpush3.msra.mxu0 %v62_v0  ;;  %v3284_v5 = vld [vmem:[#allocation2 + $0x20] sm:$0xff]  ;;  %v65_v6 = vld [vmem:[#allocation5 + $0x8] sm:$0xf]  ;;  %3048 = vset.pattern.permute.xlu1 %v3197_v7  ;;  %v64_v10 = vld [vmem:[#allocation5] sm:$0xf]  ;;  %vm238_vm2 = vcmask 31744  }
  0x3a   :  { %2687 = vmatmul.mubr.msk.f32.vlgmr.msra.gmra.mrb[0].mxu0 %vm73_vm0, %v3270_v2  ;;  %2689 = vmatprep.subr.mxu0 %v3274_v3  ;;  %v66_v9 = vld [vmem:[#allocation7 + $0x10] sm:$0xf]  ;;  %v2541_v12 = vld [vmem:[#allocation7 + $0x8] ss:$0 sm:$0xff]  ;;  %v3200_v20 = vmov 3   ;;  %v3201_v21 = vmov 5  }
  0x3b   :  { %2690 = vmatpush3.msra.mxu0 %v3274_v3  ;;  %2691 = vmatprep.mubr.msk.f32.mxu0 %vm73_vm0, %v3276_v4  ;;  %v3202_v23 = vmov 6   ;;  %v3203_v24 = vmov 7   ;;  %v3204_v25 = vmov 0   ;;  %v3205_v26 = vmov 4   ;;  %s3206_s2 = smov 96   ;;  %s3207_s24 = smov 32  }
  0x3c   :  { %3047 = vset.pattern.permute.xlu0 %v3198_v8  ;;  %2546 = vmatprep.subr.msk.mxu0 %vm245_vm1, %v65_v6  ;;  %v3208_v61 = vmov 0.0|0.0   ;;  %v67_v62 = vld [vmem:[#allocation7 + $0x18] sm:$0xf]  ;;  %vm3209_vm3 = vmmov 0   ;;  %vm627_vm4 = vcmask 130048   ;;  %vm709_vm5 = vcmask 261120  }
  0x3d   :  { %2694 = vmatprep.subr.msk.mxu1 %vm245_vm1, %v66_v9  ;;  %vm1434_vm6 = vcmask 523264  }
  0x3e   :  { %2692 = vmatmul.mubr.msk.f32.vlgmr.msra.gmra.mrb[2].mxu0 %vm73_vm0, %v3284_v5  ;;  %2695 = vmatpush3.msk.msra.mxu1 %vm245_vm1, %v66_v9 }
  0x3f   :  { %2547 = vmatpush1.msk.msra.mxu0 %vm245_vm1, %v64_v10  ;;  %316 = vmatprep.mubr.f32.mxu0 %v3199_v11 }
  0x40   :  { %2699 = vmatprep.subr.mxu1 %v3199_v11  ;;  %2859 = vmatprep.subr.bf16.mxu0 %v3208_v61 }
 0x10d   :  { %v2688_v13 = vpop.f32.mrb[0].mxu0 }
 0x10e   :  { %v152_v14 = vadd.f32 %v2688_v13, %v2541_v12  ;;  %v146_v15 = vpop.f32.mrb[1].mxu0 }
 0x10f   :  { %v147_v19 = vadd.f32 %v2541_v12, %v146_v15 }
 0x110   :  { %v156_v16 = vmax.f32 %v152_v14, 0.0 }
 0x111   :  { %v2693_v17 = vpop.f32.mrb[2].mxu0  ;;  %v155_v22 = vmax.f32 %v147_v19, 0.0 }
 0x112   :  { %444 = vperm.xlu1 %3048, %v156_v16   ;;  %424 = vperm.xlu0 %3047, %v156_v16   ;;  %v229_v18 = vpop.f32.mrb[3].mxu0 }
 0x113   :  { %2548 = vmatmul.mubr.msk.f32.vlgmr.msra.gmra.mrb[4].mxu0 %vm238_vm2, %v229_v18  ;;  %2696 = vmatprep.mubr.msk.f32.mxu1 %vm238_vm2, %v229_v18 }
 0x114   :  { %2697 = vmatmul.mubr.msk.f32.vlgmr.msra.gmra.mrb[0].mxu1 %vm238_vm2, %v2693_v17  ;;  %322 = vmatprep.mubr.f32.mxu0 %v3199_v11 }
 0x115   :  { %2700 = vmatpush3.msk.msra.mxu1 %vm245_vm1, %v67_v62  ;;  %2701 = vmatprep.mubr.msk.f32.mxu1 %vm3209_vm3, %v3199_v11  ;;  %v739_v62 = vld [vmem:[#allocation5 + $0x40] sm:$0xff] }
 0x116   :  { %3049 = vset.pattern.permute.xlu1 %v3200_v20  ;;  %3050 = vset.pattern.permute.xlu0 %v3201_v21 }
 0x117   :  { %464 = vperm.xlu1 %3049, %v156_v16   ;;  %496 = vperm.xlu0 %3050, %v156_v16  }
 0x118   :  { %2549 = vmatmul.mubr.msk.f32.gmra.mrb[6].mxu0 %vm238_vm2, %v2693_v17  ;;  %2702 = vmatmul.mubr.msk.f32.vlgmr.msra.gmra.mrb[2].mxu1 %vm238_vm2, %v3274_v3 }
 0x119   :  { %2708 = vmatprep.mubr.msk.f32.mxu0 %vm3209_vm3, %v3199_v11  ;;  %2713 = vmatprep.mubr.msk.f32.mxu1 %vm73_vm0, %v3268_v1 }
 0x11b   :  { %3051 = vset.pattern.permute.xlu1 %v3202_v23  ;;  %3052 = vset.pattern.permute.xlu0 %v3198_v8 }
 0x11c   :  { %516 = vperm.xlu1 %3051, %v156_v16   ;;  %420 = vperm.xlu0 %3052, %v155_v22  }
 0x120   :  { %3053 = vset.pattern.permute.xlu1 %v3197_v7  ;;  %3054 = vset.pattern.permute.xlu0 %v3200_v20 }
 0x121   :  { %440 = vperm.xlu1 %3053, %v155_v22   ;;  %460 = vperm.xlu0 %3054, %v155_v22  }
 0x125   :  { %3055 = vset.pattern.permute.xlu1 %v3201_v21  ;;  %3057 = vset.pattern.permute.xlu0 %v3203_v24 }
 0x126   :  { %492 = vperm.xlu1 %3055, %v155_v22   ;;  %532 = vperm.xlu0 %3057, %v155_v22  }
 0x12a   :  { %3056 = vset.pattern.permute.xlu1 %v3202_v23  ;;  %3059 = vset.pattern.permute.xlu0 %v3204_v25 }
 0x12b   :  { %512 = vperm.xlu1 %3056, %v155_v22   ;;  %336 = vperm.xlu0 %3059, %v156_v16  }
 0x12f   :  { %3058 = vset.pattern.permute.xlu1 %v3203_v24  ;;  %3063 = vset.pattern.permute.xlu0 %v3198_v8 }
 0x130   :  { %536 = vperm.xlu1 %3058, %v156_v16  }
 0x134   :  { %3060 = vset.pattern.permute.xlu1 %v3205_v26 }
 0x135   :  { %484 = vperm.xlu1 %3060, %v156_v16  }
 0x139   :  { %3061 = vset.pattern.permute.xlu1 %v3204_v25 }
 0x13a   :  { %331 = vperm.xlu1 %3061, %v155_v22  }
 0x13e   :  { %3062 = vset.pattern.permute.xlu1 %v3205_v26 }
 0x13f   :  { %480 = vperm.xlu1 %3062, %v155_v22  }
 0x143   :  { %3064 = vset.pattern.permute.xlu1 %v3198_v8 }
 0x191   :  { %v445_v27 = vpop.permute.xlu1 %444  ;;  %v425_v31 = vpop.permute.xlu0 %424 }
 0x196   :  { %v465_v28 = vpop.permute.xlu1 %464  ;;  %v497_v33 = vpop.permute.xlu0 %496 }
 0x19b   :  { %v517_v29 = vpop.permute.xlu1 %516  ;;  %v421_v35 = vpop.permute.xlu0 %420 }
 0x1a0   :  { %v441_v30 = vpop.permute.xlu1 %440  ;;  %v461_v37 = vpop.permute.xlu0 %460 }
 0x1a5   :  { %v493_v32 = vpop.permute.xlu1 %492  ;;  %v533_v39 = vpop.permute.xlu0 %532 }
 0x1aa   :  { %v513_v34 = vpop.permute.xlu1 %512  ;;  %v337_v48 = vpop.permute.xlu0 %336 }
 0x1af   :  { %v537_v36 = vpop.permute.xlu1 %536 }
 0x1b4   :  { %v3317_v38 = vpop.permute.xlu1 %484 }
 0x1b9   :  { %v332_v40 = vpop.permute.xlu1 %331 }
 0x1be   :  { %v481_v10 = vpop.permute.xlu1 %480 }
 0x1e6   :  { %v318_v41 = vpop.f32.mrb[4].mxu0 }
 0x1e7   :  { %v320_v42 = vpop.f32.mrb[5].mxu0  ;;  %v2698_v43 = vpop.f32.mrb[0].mxu1  ;;  %v339_v44 = vmul.f32 %v332_v40, %v318_v41  ;;  %v427_v45 = vmul.f32 %v421_v35, %v318_v41  ;;  %v447_v50 = vmul.f32 %v441_v30, %v318_v41  ;;  %v467_v55 = vmul.f32 %v461_v37, %v318_v41 }
 0x1e8   :  { %v410_v46 = vpop.f32.mrb[1].mxu1  ;;  %v499_v57 = vmul.f32 %v493_v32, %v320_v42  ;;  %v519_v59 = vmul.f32 %v513_v34, %v320_v42  ;;  %v539_v63 = vmul.f32 %v533_v39, %v320_v42  ;;  %v487_v19 = vmul.f32 %v481_v10, %v320_v42 }
 0x1e9   :  { %v411_v47 = vadd.f32 %v410_v46, %v339_v44  ;;  %431 = vrot.lane.b32.xlu0 %v427_v45, %s3206_s2  ;;  %v3334_v46 = vld [vmem:[#allocation2 + $0x28] sm:$0xff] }
 0x1eb   :  { %v324_v49 = vpop.f32.mrb[6].mxu0 }
 0x1ec   :  { %v326_v51 = vpop.f32.mrb[7].mxu0  ;;  %v428_v52 = vmul.f32 %v425_v31, %v324_v49  ;;  %v340_v53 = vmul.f32 %v337_v48, %v324_v49  ;;  %v448_v56 = vmul.f32 %v445_v27, %v324_v49  ;;  %v468_v58 = vmul.f32 %v465_v28, %v324_v49  ;;  %v2556_v48 = vld [vmem:[#allocation7 + $0x20] ss:$0 sm:$0xff] }
 0x1ed   :  { %451 = vrot.lane.b32.xlu0 %v447_v50, %s3192_s23  ;;  %v500_v60 = vmul.f32 %v497_v33, %v326_v51  ;;  %v520_v0 = vmul.f32 %v517_v29, %v326_v51  ;;  %v540_v6 = vmul.f32 %v537_v36, %v326_v51  ;;  %v488_v31 = vmul.f32 %v3317_v38, %v326_v51  ;;  %v623_v38 = vpop.f32.mrb[2].mxu1 }
 0x1ee   :  { %433 = vrot.lane.b32.xlu1 %v428_v52, %s3206_s2  ;;  %v416_v54 = vadd.f32 %v2698_v43, %v340_v53 }
 0x1f1   :  { %471 = vrot.lane.b32.xlu0 %v467_v55, %s3207_s24 }
 0x1f2   :  { %453 = vrot.lane.b32.xlu1 %v448_v56, %s3192_s23 }
 0x1f5   :  { %503 = vrot.lane.b32.xlu0 %v499_v57, %s3206_s2  ;;  %v737_v57 = vld [vmem:[#allocation7 + $0x38] sm:$0xff] }
 0x1f6   :  { %473 = vrot.lane.b32.xlu1 %v468_v58, %s3207_s24  ;;  %v740_v58 = vld [vmem:[#allocation5 + $0x48] sm:$0xff]  ;;  %2711 = vmatprep.subr.mxu1 %v737_v57 }
 0x1f7   :  { %2712 = vmatpush3.msra.mxu1 %v737_v57 }
 0x1f8   :  { %2714 = vmatmul.mubr.msk.f32.vlgmr.msra.gmra.mrb[4].mxu1 %vm73_vm0, %v3270_v2 }
 0x1f9   :  { %523 = vrot.lane.b32.xlu0 %v519_v59, %s3192_s23  ;;  %v744_v59 = vld [vmem:[#allocation5 + $0x88] sm:$0xff]  ;;  %990 = vmatprep.mubr.f32.mxu1 %v3199_v11 }
 0x1fa   :  { %505 = vrot.lane.b32.xlu1 %v500_v60, %s3206_s2  ;;  %v2862_v60 = vpack.c.bf16 %v744_v59, %v740_v58  ;;  %v759_v58 = vld [vmem:[#allocation7 + $0x68] sm:$0xff]  ;;  %v760_v59 = vld [vmem:[#allocation7 + $0x70] sm:$0xff] }
 0x1fc   :  { %2863 = vmatprep.subr.bf16.mxu1 %v2862_v60  ;;  %v757_v60 = vld [vmem:[#allocation7 + $0x58] sm:$0xff] }
 0x1fd   :  { %543 = vrot.lane.b32.xlu0 %v539_v63, %s3207_s24  ;;  %v743_v63 = vld [vmem:[#allocation5 + $0x80] sm:$0xff] }
 0x1fe   :  { %525 = vrot.lane.b32.xlu1 %v520_v0, %s3192_s23  ;;  %v2864_v0 = vpack.c.bf16 %v743_v63, %v739_v62  ;;  %v758_v62 = vld [vmem:[#allocation7 + $0x60] sm:$0xff]  ;;  %v2887_v63 = vpack.c.bf16 %v760_v59, %v759_v58 }
 0x200   :  { %2865 = vmatpush1.bf16.msra.mxu1 %v2864_v0 }
 0x202   :  { %545 = vrot.lane.b32.xlu1 %v540_v6, %s3207_s24  ;;  %v748_v6 = vld [vmem:[#allocation5 + $0xc8] sm:$0xff] }
 0x25b   :  { %v432_v9 = vpop.permute.xlu0 %431 }
 0x25c   :  { %v437_v13 = vadd.f32 %v432_v9, %v411_v47  ;;  %v2703_v47 = vpop.f32.mrb[3].mxu1  ;;  %v752_v9 = vld [vmem:[#allocation5 + $0x108] sm:$0xff] }
 0x25d   :  { %v2866_v10 = vpack.c.bf16 %v752_v9, %v748_v6  ;;  %v2882_v9 = vpack.c.bf16 %v758_v62, %v757_v60 }
 0x25f   :  { %v452_v12 = vpop.permute.xlu0 %451  ;;  %2867 = vmatprep.subr.bf16.mxu1 %v2866_v10  ;;  %v761_v10 = vld [vmem:[#allocation7 + $0x78] sm:$0xff] }
 0x260   :  { %v434_v14 = vpop.permute.xlu1 %433  ;;  %v457_v15 = vadd.f32 %v452_v12, %v437_v13  ;;  %v747_v12 = vld [vmem:[#allocation5 + $0xc0] sm:$0xff] }
 0x261   :  { %v438_v22 = vadd.f32 %v434_v14, %v416_v54  ;;  %v751_v13 = vld [vmem:[#allocation5 + $0x100] sm:$0xff] }
 0x262   :  { %v2868_v14 = vpack.c.bf16 %v751_v13, %v747_v12  ;;  %v762_v12 = vld [vmem:[#allocation7 + $0x80] sm:$0xff] }
 0x263   :  { %v472_v16 = vpop.permute.xlu0 %471 }
 0x264   :  { %v477_v17 = vadd.f32 %v472_v16, %v457_v15  ;;  %v454_v18 = vpop.permute.xlu1 %453  ;;  %2869 = vmatpush1.bf16.msra.mxu1 %v2868_v14 }
 0x265   :  { %v458_v27 = vadd.f32 %v454_v18, %v438_v22 }
 0x266   :  { %v489_v3 = vadd.f32 %v487_v19, %v477_v17 }
 0x267   :  { %v504_v28 = vpop.permute.xlu0 %503 }
 0x268   :  { %v474_v29 = vpop.permute.xlu1 %473  ;;  %v509_v36 = vadd.f32 %v504_v28, %v489_v3 }
 0x269   :  { %v478_v30 = vadd.f32 %v474_v29, %v458_v27 }
 0x26b   :  { %v490_v32 = vadd.f32 %v488_v31, %v478_v30  ;;  %v524_v33 = vpop.permute.xlu0 %523  ;;  %v2557_v30 = vld [vmem:[#allocation7 + $0x28] ss:$0 sm:$0xff] }
 0x26c   :  { %v506_v34 = vpop.permute.xlu1 %505  ;;  %v529_v40 = vadd.f32 %v524_v33, %v509_v36  ;;  %v742_v33 = vld [vmem:[#allocation5 + $0x58] sm:$0xff]  ;;  %v741_v36 = vld [vmem:[#allocation5 + $0x50] sm:$0xff] }
 0x26d   :  { %v510_v37 = vadd.f32 %v506_v34, %v490_v32  ;;  %v2558_v32 = vld [vmem:[#allocation7 + $0x30] ss:$0 sm:$0xff]  ;;  %v746_v34 = vld [vmem:[#allocation5 + $0x98] sm:$0xff] }
 0x26f   :  { %v544_v39 = vpop.permute.xlu0 %543 }
 0x270   :  { %v526_v35 = vpop.permute.xlu1 %525  ;;  %v549_v44 = vadd.f32 %v544_v39, %v529_v40  ;;  %v750_v39 = vld [vmem:[#allocation5 + $0xd8] sm:$0xff] }
 0x271   :  { %v530_v41 = vadd.f32 %v526_v35, %v510_v37  ;;  %v745_v37 = vld [vmem:[#allocation5 + $0x90] sm:$0xff]  ;;  %v754_v40 = vld [vmem:[#allocation5 + $0x118] sm:$0xff] }
 0x274   :  { %v546_v43 = vpop.permute.xlu1 %545 }
 0x275   :  { %v550_v42 = vadd.f32 %v546_v43, %v530_v41  ;;  %v2870_v43 = vpack.c.bf16 %v746_v34, %v742_v33 }
 0x277   :  { %v2860_v45 = vpack.c.bf16 %v550_v42, %v549_v44  ;;  %v2872_v44 = vpack.c.bf16 %v745_v37, %v741_v36  ;;  %v2874_v42 = vpack.c.bf16 %v754_v40, %v750_v39 }
 0x279   :  { %2861 = vmatpush3.bf16.msra.mxu0 %v2860_v45  ;;  %v749_v45 = vld [vmem:[#allocation5 + $0xd0] sm:$0xff] }
 0x27c   :  { %2709 = vmatmul.mubr.msk.f32.vlgmr.msra.gmra.mrb[8].mxu0 %vm627_vm4, %v3334_v46 }
 0x27d   :  { %2718 = vmatprep.mubr.msk.f32.mxu0 %vm73_vm0, %v3276_v4 }
 0x34f   :  { %v697_v49 = vpop.f32.mrb[8].mxu0 }
 0x350   :  { %v698_v50 = vadd.f32 %v697_v49, %v623_v38  ;;  %v2710_v51 = vpop.f32.mrb[9].mxu0  ;;  %v753_v38 = vld [vmem:[#allocation5 + $0x110] sm:$0xff] }
 0x351   :  { %v2876_v47 = vpack.c.bf16 %v753_v38, %v749_v45  ;;  %v756_v49 = vld [vmem:[#allocation7 + $0x50] sm:$0xff]  ;;  %v2715_v51 = vpop.f32.mrb[4].mxu1 }
 0x352   :  { %v705_v52 = vadd.f32 %v2556_v48, %v698_v50  ;;  %v755_v48 = vld [vmem:[#allocation7 + $0x48] sm:$0xff] }
 0x353   :  { %v2878_v50 = vpack.c.bf16 %v756_v49, %v755_v48 }
 0x354   :  { %v708_v53 = vmax.f32 %v705_v52, 0.0  ;;  %v2559_v52 = vld [vmem:[#allocation7 + $0x40] ss:$0 sm:$0xff] }
 0x355   :  { %2879 = vmatprep.subr.bf16.mxu1 %v2878_v50 }
 0x356   :  { %v710_v54 = vsel %vm709_vm5, %v708_v53, 0.0  ;;  %v715_v55 = vmul.f32 %v708_v53, %v708_v53 }
 0x357   :  { %711 = vadd.xlane.f32.xlu0 %v710_v54  ;;  %v834_v54 = vpop.f32.mrb[5].mxu1 }
 0x358   :  { %v716_v56 = vsel %vm709_vm5, %v715_v55, 0.0  ;;  %v835_v55 = vadd.f32 %v2559_v52, %v834_v54 }
 0x359   :  { %717 = vadd.xlane.f32.xlu1 %v716_v56 }
 0x35a   :  { %v843_v57 = vmax.f32 %v835_v55, 0.0 }
 0x36d   :  { %1168 = vperm.xlu0 %3063, %v843_v57  }
 0x371   :  { %3068 = vset.pattern.permute.xlu0 %v3204_v25 }
 0x372   :  { %1082 = vperm.xlu0 %3068, %v843_v57  }
 0x376   :  { %3071 = vset.pattern.permute.xlu0 %v3197_v7 }
 0x3e4   :  { %v712_v15 = vpop.xlane.xlu0 %711 }
 0x3e5   :  { %v714_v16 = vmul.f32 0.03125, %v712_v15 }
 0x3e6   :  { %v718_v17 = vpop.xlane.xlu1 %717 }
 0x3e7   :  { %v720_v18 = vmul.f32 %v714_v16, %v714_v16  ;;  %v719_v19 = vmul.f32 0.03125, %v718_v17  ;;  %v723_v28 = vsub.f32 %v708_v53, %v714_v16  ;;  %v840_v53 = vadd.f32 %v2715_v51, %v2559_v52 }
 0x3e9   :  { %v721_v22 = vsub.f32 %v719_v19, %v720_v18  ;;  %v844_v56 = vmax.f32 %v840_v53, 0.0 }
 0x3eb   :  { %v722_v3 = vmax.f32 %v721_v22, 0.0  ;;  %1172 = vperm.xlu1 %3064, %v844_v56   ;;  %1192 = vperm.xlu0 %3071, %v844_v56  }
 0x3ec   :  { %v1169_v22 = vpop.permute.xlu0 %1168 }
 0x3ed   :  { %v724_v27 = vadd.f32 1e-05, %v722_v3 }
 0x3ef   :  { %3087 = vrsqrt.f32 %v724_v27  ;;  %3065 = vset.pattern.permute.xlu1 %v3200_v20  ;;  %3073 = vset.pattern.permute.xlu0 %v3202_v23 }
 0x3f0   :  { %1200 = vperm.xlu1 %3065, %v843_v57   ;;  %1252 = vperm.xlu0 %3073, %v843_v57  }
 0x3f1   :  { %v1083_v37 = vpop.permute.xlu0 %1082 }
 0x3f4   :  { %1204 = vperm.xlu1 %3065, %v844_v56   ;;  %3075 = vset.pattern.permute.xlu0 %v3204_v25 }
 0x3f8   :  { %3066 = vset.pattern.permute.xlu1 %v3201_v21 }
 0x3f9   :  { %v3088_v29 = vpop.eup %3087  ;;  %1232 = vperm.xlu1 %3066, %v843_v57  }
 0x3fa   :  { %v726_v31 = vmul.f32 %v3088_v29, %v723_v28 }
 0x3fc   :  { %v731_v35 = vmul.f32 %v2557_v30, %v726_v31 }
 0x3fd   :  { %1236 = vperm.xlu1 %3066, %v844_v56  }
 0x3fe   :  { %v3345_v41 = vadd.f32 %v2558_v32, %v731_v35 }
 0x400   :  { %2716 = vmatprep.subr.mxu0 %v3345_v41 }
 0x401   :  { %2717 = vmatpush3.msra.mxu0 %v3345_v41  ;;  %3067 = vset.pattern.permute.xlu1 %v3203_v24 }
 0x402   :  { %2719 = vmatmul.mubr.msk.f32.vlgmr.msra.gmra.mrb[10].mxu0 %vm73_vm0, %v3284_v5  ;;  %2871 = vmatprep.subr.bf16.mxu0 %v2870_v43 }
 0x403   :  { %2873 = vmatpush1.bf16.msra.mxu0 %v2872_v44  ;;  %1067 = vmatprep.mubr.f32.mxu0 %v3199_v11 }
 0x404   :  { %2875 = vmatprep.subr.bf16.mxu0 %v2874_v42  ;;  %1264 = vperm.xlu1 %3067, %v843_v57  }
 0x407   :  { %2877 = vmatpush1.bf16.msra.mxu0 %v2876_v47 }
 0x408   :  { %2886 = vmatprep.subr.bf16.mxu0 %v3208_v61  ;;  %1268 = vperm.xlu1 %3067, %v844_v56  }
 0x40c   :  { %3069 = vset.pattern.permute.xlu1 %v3204_v25 }
 0x40d   :  { %1087 = vperm.xlu1 %3069, %v844_v56  }
 0x411   :  { %3070 = vset.pattern.permute.xlu1 %v3197_v7 }
 0x412   :  { %1188 = vperm.xlu1 %3070, %v843_v57  }
 0x416   :  { %3072 = vset.pattern.permute.xlu1 %v3205_v26 }
 0x417   :  { %1220 = vperm.xlu1 %3072, %v843_v57  }
 0x41b   :  { %1224 = vperm.xlu1 %3072, %v844_v56  }
 0x41f   :  { %3074 = vset.pattern.permute.xlu1 %v3202_v23 }
 0x420   :  { %1256 = vperm.xlu1 %3074, %v844_v56  }
 0x424   :  { %3076 = vset.pattern.permute.xlu1 %v3204_v25  ;;  %v2890_v25 = vpack.c.bf16 %v762_v12, %v761_v10 }
 0x46a   :  { %v1173_v13 = vpop.permute.xlu1 %1172  ;;  %v1193_v54 = vpop.permute.xlu0 %1192 }
 0x46f   :  { %v1201_v14 = vpop.permute.xlu1 %1200  ;;  %v1253_v56 = vpop.permute.xlu0 %1252 }
 0x473   :  { %v1205_v15 = vpop.permute.xlu1 %1204 }
 0x478   :  { %v1233_v16 = vpop.permute.xlu1 %1232 }
 0x47c   :  { %v1237_v17 = vpop.permute.xlu1 %1236 }
 0x483   :  { %v1265_v18 = vpop.permute.xlu1 %1264 }
 0x487   :  { %v1269_v19 = vpop.permute.xlu1 %1268 }
 0x48c   :  { %v1088_v35 = vpop.permute.xlu1 %1087 }
 0x491   :  { %v1189_v52 = vpop.permute.xlu1 %1188 }
 0x496   :  { %v1221_v53 = vpop.permute.xlu1 %1220 }
 0x49a   :  { %v1225_v55 = vpop.permute.xlu1 %1224 }
 0x49f   :  { %v1257_v57 = vpop.permute.xlu1 %1256 }
 0x4d5   :  { %v2720_v0 = vpop.f32.mrb[10].mxu0 }
 0x4d6   :  { %v911_v6 = vpop.f32.mrb[11].mxu0 }
 0x4d7   :  { %2564 = vmatmul.mubr.msk.f32.vlgmr.msra.gmra.mrb[6].mxu1 %vm709_vm5, %v911_v6  ;;  %2566 = vmatmul.mubr.msk.f32.vlgmr.msra.gmra.mrb[12].mxu0 %vm709_vm5, %v911_v6 }
 0x4d8   :  { %2881 = vmatpush3.bf16.msra.mxu1 %v2878_v50  ;;  %2888 = vmatpush3.bf16.msra.mxu0 %v2887_v63 }
 0x4d9   :  { %996 = vmatprep.mubr.f32.mxu1 %v3199_v11  ;;  %1073 = vmatprep.mubr.f32.mxu0 %v3199_v11 }
 0x4da   :  { %2883 = vmatprep.subr.bf16.mxu1 %v2882_v9  ;;  %2889 = vmatprep.subr.bf16.mxu0 %v3208_v61 }
 0x4db   :  { %2565 = vmatmul.mubr.msk.f32.gmra.mrb[8].mxu1 %vm709_vm5, %v2720_v0  ;;  %2567 = vmatmul.mubr.msk.f32.gmra.mrb[14].mxu0 %vm709_vm5, %v2720_v0 }
 0x4dc   :  { %2885 = vmatpush3.bf16.msra.mxu1 %v2882_v9  ;;  %2729 = vmatprep.mubr.msk.f32.mxu1 %vm709_vm5, %v911_v6 }
 0x4dd   :  { %2891 = vmatpush3.bf16.msra.mxu0 %v2890_v25  ;;  %2740 = vmatprep.mubr.msk.f32.mxu0 %vm3209_vm3, %v3199_v11 }
 0x4de   :  { %2892 = vmatprep.subr.bf16.mxu1 %v3208_v61 }
 0x4df   :  { %2730 = vmatmul.mubr.msk.f32.vlgmr.msra.gmra.mrb[10].mxu1 %vm709_vm5, %v2720_v0 }
 0x4e0   :  { %2741 = vmatmul.mubr.msk.f32.vlgmr.msra.gmra.mrb[16].mxu0 %vm709_vm5, %v3345_v41  ;;  %2747 = vmatprep.mubr.msk.f32.mxu1 %vm3209_vm3, %v3199_v11 }
 0x4e1   :  { %2752 = vmatprep.mubr.msk.f32.mxu0 %vm73_vm0, %v3268_v1 }
 0x5aa   :  { %v992_v3 = vpop.f32.mrb[6].mxu1  ;;  %v1069_v27 = vpop.f32.mrb[12].mxu0 }
 0x5ab   :  { %v994_v28 = vpop.f32.mrb[7].mxu1  ;;  %v1071_v29 = vpop.f32.mrb[13].mxu0  ;;  %v1175_v30 = vmul.f32 %v1169_v22, %v992_v3  ;;  %v1090_v40 = vmul.f32 %v1083_v37, %v992_v3  ;;  %v1239_v49 = vmul.f32 %v1233_v16, %v1069_v27  ;;  %v1227_v25 = vmul.f32 %v1221_v53, %v1069_v27  ;;  %v2572_v27 = vld [vmem:[#allocation7 + $0x88] ss:$0 sm:$0xff]  ;;  %v1480_v53 = vld [vmem:[#allocation5 + $0x1c0] sm:$0xff] }
 0x5ac   :  { %v1207_v45 = vmul.f32 %v1201_v14, %v994_v28  ;;  %v1271_v51 = vmul.f32 %v1265_v18, %v1071_v29  ;;  %v1195_v59 = vmul.f32 %v1189_v52, %v994_v28  ;;  %v1259_v22 = vmul.f32 %v1253_v56, %v1071_v29  ;;  %v1497_v56 = vld [vmem:[#allocation5 + $0x248] sm:$0xff] }
 0x5ad   :  { %1179 = vrot.lane.b32.xlu0 %v1175_v30, %s3192_s23 }
 0x5ae   :  { %v998_v31 = vpop.f32.mrb[8].mxu1  ;;  %v1075_v32 = vpop.f32.mrb[14].mxu0 }
 0x5af   :  { %v1000_v33 = vpop.f32.mrb[9].mxu1  ;;  %v1077_v34 = vpop.f32.mrb[15].mxu0  ;;  %v1176_v1 = vmul.f32 %v1173_v13, %v998_v31  ;;  %v1091_v39 = vmul.f32 %v1088_v35, %v998_v31  ;;  %v1240_v48 = vmul.f32 %v1237_v17, %v1075_v32  ;;  %v1228_v13 = vmul.f32 %v1225_v55, %v1075_v32 }
 0x5b0   :  { %v1208_v36 = vmul.f32 %v1205_v15, %v1000_v33  ;;  %v1272_v50 = vmul.f32 %v1269_v19, %v1077_v34  ;;  %v1196_v0 = vmul.f32 %v1193_v54, %v1000_v33  ;;  %v1260_v3 = vmul.f32 %v1257_v57, %v1077_v34  ;;  %v1488_v54 = vld [vmem:[#allocation5 + $0x200] sm:$0xff]  ;;  %v1505_v57 = vld [vmem:[#allocation5 + $0x288] sm:$0xff] }
 0x5b1   :  { %1181 = vrot.lane.b32.xlu1 %v1176_v1, %s3192_s23  ;;  %v2901_v55 = vpack.c.bf16 %v1488_v54, %v1480_v53  ;;  %v1477_v53 = vld [vmem:[#allocation5 + $0x1a8] sm:$0xff]  ;;  %v1471_v54 = vld [vmem:[#allocation5 + $0x178] sm:$0xff] }
 0x5b2   :  { %1213 = vrot.lane.b32.xlu0 %v1208_v36, %s3192_s23  ;;  %v2731_v41 = vpop.f32.mrb[10].mxu1 }
 0x5b3   :  { %v1352_v43 = vpop.f32.mrb[16].mxu0  ;;  %v1164_v44 = vadd.f32 %v2731_v41, %v1091_v39  ;;  %v1158_v42 = vpop.f32.mrb[11].mxu1 }
 0x5b4   :  { %v1159_v38 = vadd.f32 %v1158_v42, %v1090_v40  ;;  %v2742_v47 = vpop.f32.mrb[17].mxu0 }
 0x5b5   :  { %1211 = vrot.lane.b32.xlu1 %v1207_v45, %s3192_s23  ;;  %v1465_v47 = vld [vmem:[#allocation5 + $0x148] sm:$0xff] }
 0x5b6   :  { %1245 = vrot.lane.b32.xlu0 %v1240_v48, %s3192_s23 }
 0x5b9   :  { %1243 = vrot.lane.b32.xlu1 %v1239_v49, %s3192_s23  ;;  %v1472_v49 = vld [vmem:[#allocation5 + $0x180] sm:$0xff] }
 0x5ba   :  { %1277 = vrot.lane.b32.xlu0 %v1272_v50, %s3192_s23  ;;  %v1481_v50 = vld [vmem:[#allocation5 + $0x1c8] sm:$0xff] }
 0x5bd   :  { %1275 = vrot.lane.b32.xlu1 %v1271_v51, %s3192_s23  ;;  %v1489_v51 = vld [vmem:[#allocation5 + $0x208] sm:$0xff]  ;;  %s3210_s23 = smov [#allocation8]  }
 0x5be   :  { %v2899_v52 = vpack.c.bf16 %v1489_v51, %v1481_v50  ;;  %v1514_v50 = vld [vmem:[#allocation5 + $0x2d0] sm:$0xff]  ;;  %s2531_s25 = sshll.u32 %s3210_s23, 4  ;;  %s2532_s25 = int_to_ptr.vmem [resolvable:$true] %s2531_s25 }
 0x5bf   :  { %v1522_v51 = vld [vmem:[#allocation5 + $0x310] sm:$0xff]  ;;  %s3162_s26 = scalar_lea.vmem %s2532_s25, 256  ;;  %p3167_p11 = scmp.lt.s32.totalorder %s2532_s25, %s2532_s25 }
 0x5c0   :  { %p3163_p10 = scmp.ne.s32.totalorder %s2532_s25, %s3162_s26  ;;  %p3168_p12 = scmp.lt.s32.totalorder %s3162_s26, %s3162_s26 }
 0x5c2   :  { %p3169_p13 = por %p3168_p12, %p3167_p11 }
 0x5c4   :  { %p3170_p0 = pnand %p3169_p13, %p3163_p10 }
 0x61f   :  { %v1180_v58 = vpop.permute.xlu0 %1179 }
 0x620   :  { %v1185_v60 = vadd.f32 %v1180_v58, %v1159_v38  ;;  %v1462_v38 = vld [vmem:[#allocation7 + $0xa0] sm:$0xff]  ;;  %v2903_v58 = vpack.c.bf16 %v1505_v57, %v1497_v56  ;;  %v1479_v56 = vld [vmem:[#allocation5 + $0x1b8] sm:$0xff] }
 0x621   :  { %2750 = vmatprep.subr.mxu0 %v1462_v38  ;;  %v2943_v57 = vpack.c.bf16 %v1479_v56, %v1471_v54  ;;  %v1531_v54 = vld [vmem:[#allocation7 + $0xc8] sm:$0xff]  ;;  %v1538_v56 = vld [vmem:[#allocation7 + $0x100] sm:$0xff] }
 0x622   :  { %v1197_v62 = vadd.f32 %v1195_v59, %v1185_v60  ;;  %2751 = vmatpush3.msra.mxu0 %v1462_v38  ;;  %v1496_v59 = vld [vmem:[#allocation5 + $0x240] sm:$0xff] }
 0x623   :  { %v1182_v63 = vpop.permute.xlu1 %1181  ;;  %2753 = vmatmul.mubr.msk.f32.vlgmr.msra.gmra.mrb[18].mxu0 %vm73_vm0, %v3270_v2  ;;  %v1504_v60 = vld [vmem:[#allocation5 + $0x280] sm:$0xff]  ;;  %v1513_v2 = vld [vmem:[#allocation5 + $0x2c8] sm:$0xff] }
 0x624   :  { %v1186_v6 = vadd.f32 %v1182_v63, %v1164_v44  ;;  %v1214_v9 = vpop.permute.xlu0 %1213  ;;  %1771 = vmatprep.mubr.f32.mxu0 %v3199_v11  ;;  %v1521_v63 = vld [vmem:[#allocation5 + $0x308] sm:$0xff] }
 0x626   :  { %v1198_v10 = vadd.f32 %v1196_v0, %v1186_v6  ;;  %v2907_v0 = vpack.c.bf16 %v1521_v63, %v1513_v2  ;;  %v1512_v6 = vld [vmem:[#allocation5 + $0x2c0] sm:$0xff] }
 0x627   :  { %v1212_v12 = vpop.permute.xlu1 %1211 }
 0x628   :  { %v1218_v14 = vadd.f32 %v1214_v9, %v1198_v10  ;;  %v1217_v15 = vadd.f32 %v1212_v12, %v1197_v62  ;;  %v1246_v16 = vpop.permute.xlu0 %1245  ;;  %v2905_v62 = vpack.c.bf16 %v1504_v60, %v1496_v59  ;;  %v1520_v9 = vld [vmem:[#allocation5 + $0x300] sm:$0xff]  ;;  %v2575_v59 = vld [vmem:[#allocation7 + $0xa8] ss:$0 sm:$0xff] }
 0x629   :  { %v2909_v10 = vpack.c.bf16 %v1520_v9, %v1512_v6  ;;  %v1470_v6 = vld [vmem:[#allocation5 + $0x170] sm:$0xff] }
 0x62a   :  { %v1230_v17 = vadd.f32 %v1228_v13, %v1218_v14  ;;  %v1229_v18 = vadd.f32 %v1227_v25, %v1217_v15  ;;  %v1478_v9 = vld [vmem:[#allocation5 + $0x1b0] sm:$0xff] }
 0x62b   :  { %v1244_v19 = vpop.permute.xlu1 %1243 }
 0x62c   :  { %v1250_v30 = vadd.f32 %v1246_v16, %v1230_v17  ;;  %v1249_v28 = vadd.f32 %v1244_v19, %v1229_v18  ;;  %v1278_v35 = vpop.permute.xlu0 %1277 }
 0x62e   :  { %v1262_v31 = vadd.f32 %v1260_v3, %v1250_v30  ;;  %v1261_v1 = vadd.f32 %v1259_v22, %v1249_v28  ;;  %v2573_v3 = vld [vmem:[#allocation7 + $0x90] ss:$0 sm:$0xff]  ;;  %v2574_v28 = vld [vmem:[#allocation7 + $0x98] ss:$0 sm:$0xff] }
 0x62f   :  { %v1276_v33 = vpop.permute.xlu1 %1275 }
 0x630   :  { %v1282_v36 = vadd.f32 %v1278_v35, %v1262_v31  ;;  %v1281_v37 = vadd.f32 %v1276_v33, %v1261_v1  ;;  %v1467_v31 = vld [vmem:[#allocation5 + $0x158] sm:$0xff]  ;;  %v1466_v33 = vld [vmem:[#allocation5 + $0x150] sm:$0xff] }
 0x631   :  { %v1475_v1 = vld [vmem:[#allocation5 + $0x198] sm:$0xff] }
 0x632   :  { %v2893_v39 = vpack.c.bf16 %v1282_v36, %v1281_v37  ;;  %v1474_v36 = vld [vmem:[#allocation5 + $0x190] sm:$0xff]  ;;  %v1483_v37 = vld [vmem:[#allocation5 + $0x1d8] sm:$0xff] }
 0x634   :  { %2894 = vmatpush3.bf16.msra.mxu1 %v2893_v39  ;;  %v1491_v39 = vld [vmem:[#allocation5 + $0x218] sm:$0xff] }
 0x637   :  { %2748 = vmatmul.mubr.msk.f32.vlgmr.msra.gmra.mrb[12].mxu1 %vm627_vm4, %v3334_v46  ;;  %v1473_v46 = vld [vmem:[#allocation5 + $0x188] sm:$0xff] }
 0x638   :  { %2757 = vmatprep.mubr.msk.f32.mxu1 %vm73_vm0, %v3276_v4  ;;  %v2895_v48 = vpack.c.bf16 %v1473_v46, %v1465_v47  ;;  %v1464_v4 = vld [vmem:[#allocation5 + $0x140] sm:$0xff]  ;;  %v1498_v47 = vld [vmem:[#allocation5 + $0x250] sm:$0xff] }
 0x639   :  { %v1506_v46 = vld [vmem:[#allocation5 + $0x290] sm:$0xff] }
 0x63a   :  { %2896 = vmatprep.subr.bf16.mxu0 %v2895_v48  ;;  %v1515_v48 = vld [vmem:[#allocation5 + $0x2d8] sm:$0xff] }
 0x70a   :  { %v1422_v32 = vpop.f32.mrb[12].mxu1 }
 0x70b   :  { %v1423_v29 = vadd.f32 %v1422_v32, %v1352_v43  ;;  %v2749_v34 = vpop.f32.mrb[13].mxu1  ;;  %v2897_v43 = vpack.c.bf16 %v1472_v49, %v1464_v4  ;;  %v2911_v32 = vpack.c.bf16 %v1475_v1, %v1467_v31  ;;  %v1523_v4 = vld [vmem:[#allocation5 + $0x318] sm:$0xff]  ;;  %v2921_v49 = vpack.c.bf16 %v1506_v46, %v1498_v47  ;;  %v1500_v1 = vld [vmem:[#allocation5 + $0x260] sm:$0xff]  ;;  %v1518_v46 = vld [vmem:[#allocation5 + $0x2f0] sm:$0xff] }
 0x70c   :  { %v2915_v34 = vpack.c.bf16 %v1491_v39, %v1483_v37  ;;  %v1502_v37 = vld [vmem:[#allocation5 + $0x270] sm:$0xff]  ;;  %v1524_v47 = vld [vmem:[#allocation5 + $0x320] sm:$0xff] }
 0x70d   :  { %v1430_v40 = vadd.f32 %v2572_v27, %v1423_v29  ;;  %2898 = vmatpush1.bf16.msra.mxu0 %v2897_v43  ;;  %v2913_v29 = vpack.c.bf16 %v1474_v36, %v1466_v33  ;;  %v2923_v43 = vpack.c.bf16 %v1523_v4, %v1515_v48  ;;  %v1510_v39 = vld [vmem:[#allocation5 + $0x2b0] sm:$0xff] }
 0x70e   :  { %2900 = vmatprep.subr.bf16.mxu0 %v2899_v52  ;;  %v2925_v52 = vpack.c.bf16 %v1522_v51, %v1514_v50  ;;  %v1526_v48 = vld [vmem:[#allocation5 + $0x330] sm:$0xff] }
 0x70f   :  { %v1433_v41 = vmax.f32 %v1430_v40, 0.0  ;;  %v1482_v40 = vld [vmem:[#allocation5 + $0x1d0] sm:$0xff]  ;;  %v2957_v50 = vpack.c.bf16 %v1526_v48, %v1518_v46 }
 0x710   :  { %v1528_v4 = vld [vmem:[#allocation7 + $0xb0] sm:$0xff] }
 0x711   :  { %v1435_v44 = vsel %vm1434_vm6, %v1433_v41, 0.0  ;;  %v1440_v42 = vmul.f32 %v1433_v41, %v1433_v41  ;;  %2902 = vmatpush1.bf16.msra.mxu0 %v2901_v55 }
 0x712   :  { %1436 = vadd.xlane.f32.xlu1 %v1435_v44  ;;  %2904 = vmatprep.subr.bf16.mxu0 %v2903_v58  ;;  %v1499_v44 = vld [vmem:[#allocation5 + $0x258] sm:$0xff]  ;;  %v2754_v58 = vpop.f32.mrb[18].mxu0 }
 0x713   :  { %v1441_v45 = vsel %vm1434_vm6, %v1440_v42, 0.0  ;;  %v1507_v42 = vld [vmem:[#allocation5 + $0x298] sm:$0xff]  ;;  %v1621_v60 = vadd.f32 %v2754_v58, %v2575_v59  ;;  %v1615_v2 = vpop.f32.mrb[19].mxu0  ;;  %v1539_v58 = vld [vmem:[#allocation7 + $0x108] sm:$0xff] }
 0x714   :  { %1442 = vadd.xlane.f32.xlu0 %v1441_v45  ;;  %v2919_v38 = vpack.c.bf16 %v1507_v42, %v1499_v44  ;;  %v1616_v63 = vadd.f32 %v2575_v59, %v1615_v2  ;;  %v2953_v44 = vpack.c.bf16 %v1510_v39, %v1502_v37  ;;  %v1516_v42 = vld [vmem:[#allocation5 + $0x2e0] sm:$0xff]  ;;  %v1532_v59 = vld [vmem:[#allocation7 + $0xd0] sm:$0xff] }
 0x715   :  { %2906 = vmatpush1.bf16.msra.mxu0 %v2905_v62  ;;  %v1625_v62 = vmax.f32 %v1621_v60, 0.0  ;;  %v1533_v60 = vld [vmem:[#allocation7 + $0xd8] sm:$0xff] }
 0x716   :  { %2908 = vmatprep.subr.bf16.mxu0 %v2907_v0  ;;  %v1624_v0 = vmax.f32 %v1616_v63, 0.0  ;;  %v2967_v2 = vpack.c.bf16 %v1533_v60, %v1532_v59  ;;  %v1540_v63 = vld [vmem:[#allocation7 + $0x110] sm:$0xff] }
 0x719   :  { %2910 = vmatpush1.bf16.msra.mxu0 %v2909_v10  ;;  %v1493_v10 = vld [vmem:[#allocation5 + $0x228] sm:$0xff] }
 0x723   :  { %2022 = vperm.xlu1 %3076, %v1625_v62  }
 0x727   :  { %3077 = vset.pattern.permute.xlu1 %v3198_v8  ;;  %v1476_v8 = vld [vmem:[#allocation5 + $0x1a0] sm:$0xff] }
 0x728   :  { %2103 = vperm.xlu1 %3077, %v1624_v0  }
 0x72a   :  { %2017 = vperm.xlu0 %3075, %v1624_v0  }
 0x72c   :  { %2107 = vperm.xlu1 %3077, %v1625_v62  }
 0x72e   :  { %3080 = vset.pattern.permute.xlu0 %v3205_v26 }
 0x72f   :  { %2139 = vperm.xlu0 %3080, %v1624_v0  }
 0x730   :  { %3078 = vset.pattern.permute.xlu1 %v3197_v7  ;;  %v1468_v7 = vld [vmem:[#allocation5 + $0x160] sm:$0xff] }
 0x731   :  { %2115 = vperm.xlu1 %3078, %v1624_v0  }
 0x733   :  { %3083 = vset.pattern.permute.xlu0 %v3201_v21 }
 0x734   :  { %2155 = vperm.xlu0 %3083, %v1625_v62  }
 0x735   :  { %2119 = vperm.xlu1 %3078, %v1625_v62  }
 0x738   :  { %3085 = vset.pattern.permute.xlu0 %v3203_v24 }
 0x739   :  { %2175 = vperm.xlu0 %3085, %v1624_v0   ;;  %3079 = vset.pattern.permute.xlu1 %v3200_v20  ;;  %v1485_v20 = vld [vmem:[#allocation5 + $0x1e8] sm:$0xff] }
 0x73a   :  { %2127 = vperm.xlu1 %3079, %v1624_v0  }
 0x73e   :  { %2131 = vperm.xlu1 %3079, %v1625_v62  }
 0x742   :  { %3081 = vset.pattern.permute.xlu1 %v3205_v26  ;;  %v2929_v26 = vpack.c.bf16 %v1476_v8, %v1468_v7  ;;  %v1534_v7 = vld [vmem:[#allocation7 + $0xe0] sm:$0xff]  ;;  %v1535_v8 = vld [vmem:[#allocation7 + $0xe8] sm:$0xff] }
 0x743   :  { %2143 = vperm.xlu1 %3081, %v1625_v62  }
 0x747   :  { %3082 = vset.pattern.permute.xlu1 %v3201_v21  ;;  %v1492_v21 = vld [vmem:[#allocation5 + $0x220] sm:$0xff] }
 0x748   :  { %2151 = vperm.xlu1 %3082, %v1624_v0  }
 0x74c   :  { %3084 = vset.pattern.permute.xlu1 %v3202_v23  ;;  %v1486_v23 = vld [vmem:[#allocation5 + $0x1f0] sm:$0xff] }
 0x74d   :  { %2163 = vperm.xlu1 %3084, %v1624_v0   ;;  %v1541_v0 = vld [vmem:[#allocation7 + $0x118] sm:$0xff] }
 0x751   :  { %2167 = vperm.xlu1 %3084, %v1625_v62  }
 0x755   :  { %3086 = vset.pattern.permute.xlu1 %v3203_v24  ;;  %v2931_v24 = vpack.c.bf16 %v1493_v10, %v1485_v20  ;;  %v1542_v20 = vld [vmem:[#allocation7 + $0x120] sm:$0xff]  ;;  %v1543_v10 = vld [vmem:[#allocation7 + $0x128] sm:$0xff] }
 0x756   :  { %2179 = vperm.xlu1 %3086, %v1625_v62   ;;  %v2979_v62 = vpack.c.bf16 %v1539_v58, %v1538_v56 }
 0x79f   :  { %v1437_v12 = vpop.xlane.xlu1 %1436 }
 0x7a0   :  { %v1439_v25 = vmul.f32 0.015625, %v1437_v12  ;;  %v1487_v12 = vld [vmem:[#allocation5 + $0x1f8] sm:$0xff] }
 0x7a1   :  { %v1443_v13 = vpop.xlane.xlu0 %1442 }
 0x7a2   :  { %v1445_v14 = vmul.f32 %v1439_v25, %v1439_v25  ;;  %v1444_v15 = vmul.f32 0.015625, %v1443_v13  ;;  %v1448_v19 = vsub.f32 %v1433_v41, %v1439_v25  ;;  %v1490_v41 = vld [vmem:[#allocation5 + $0x210] sm:$0xff]  ;;  %v1495_v25 = vld [vmem:[#allocation5 + $0x238] sm:$0xff]  ;;  %v2945_v13 = vpack.c.bf16 %v1478_v9, %v1470_v6 }
 0x7a3   :  { %v2917_v45 = vpack.c.bf16 %v1490_v41, %v1482_v40  ;;  %v1527_v40 = vld [vmem:[#allocation5 + $0x338] sm:$0xff]  ;;  %v2982_v6 = vpack.c.bf16 %v1541_v0, %v1540_v63  ;;  %v2971_v9 = vpack.c.bf16 %v1535_v8, %v1534_v7 }
 0x7a4   :  { %v1446_v16 = vsub.f32 %v1444_v15, %v1445_v14  ;;  %v1484_v14 = vld [vmem:[#allocation5 + $0x1e0] sm:$0xff] }
 0x7a6   :  { %v1447_v17 = vmax.f32 %v1446_v16, 0.0  ;;  %v1494_v16 = vld [vmem:[#allocation5 + $0x230] sm:$0xff] }
 0x7a7   :  { %v2949_v31 = vpack.c.bf16 %v1494_v16, %v1486_v23  ;;  %v2338_v16 = vld [vmem:[#allocation7 + $0x158] sm:$0xff] }
 0x7a8   :  { %v1449_v18 = vadd.f32 1e-05, %v1447_v17  ;;  %v1501_v17 = vld [vmem:[#allocation5 + $0x268] sm:$0xff] }
 0x7aa   :  { %3089 = vrsqrt.f32 %v1449_v18 }
 0x7b4   :  { %v3090_v22 = vpop.eup %3089 }
 0x7b5   :  { %v1451_v30 = vmul.f32 %v3090_v22, %v1448_v19  ;;  %v2947_v19 = vpack.c.bf16 %v1495_v25, %v1487_v12  ;;  %v1509_v22 = vld [vmem:[#allocation5 + $0x2a8] sm:$0xff]  ;;  %v2985_v12 = vpack.c.bf16 %v1543_v10, %v1542_v20  ;;  %v2334_v25 = vld [vmem:[#allocation7 + $0x138] sm:$0xff] }
 0x7b6   :  { %v2935_v33 = vpack.c.bf16 %v1509_v22, %v1501_v17  ;;  %v2343_v22 = vld [vmem:[#allocation7 + $0x180] sm:$0xff] }
 0x7b7   :  { %v1456_v35 = vmul.f32 %v2573_v3, %v1451_v30  ;;  %v1503_v3 = vld [vmem:[#allocation5 + $0x278] sm:$0xff] }
 0x7b8   :  { %v1511_v30 = vld [vmem:[#allocation5 + $0x2b8] sm:$0xff] }
 0x7b9   :  { %v3400_v27 = vadd.f32 %v2574_v28, %v1456_v35  ;;  %v2933_v28 = vpack.c.bf16 %v1492_v21, %v1484_v14  ;;  %v1508_v35 = vld [vmem:[#allocation5 + $0x2a0] sm:$0xff]  ;;  %v2951_v36 = vpack.c.bf16 %v1511_v30, %v1503_v3  ;;  %v2337_v21 = vld [vmem:[#allocation7 + $0x150] sm:$0xff]  ;;  %v2344_v30 = vld [vmem:[#allocation7 + $0x188] sm:$0xff] }
 0x7ba   :  { %v2937_v41 = vpack.c.bf16 %v1508_v35, %v1500_v1  ;;  %v2023_v1 = vpop.permute.xlu1 %2022 }
 0x7bb   :  { %2755 = vmatprep.subr.mxu1 %v3400_v27 }
 0x7bc   :  { %2756 = vmatpush3.msra.mxu1 %v3400_v27 }
 0x7bd   :  { %2758 = vmatmul.mubr.msk.f32.vlgmr.msra.gmra.mrb[14].mxu1 %vm73_vm0, %v3284_v5  ;;  %2912 = vmatprep.subr.bf16.mxu1 %v2911_v32  ;;  %v1469_v5 = vld [vmem:[#allocation5 + $0x168] sm:$0xff] }
 0x7be   :  { %2914 = vmatpush1.bf16.msra.mxu1 %v2913_v29  ;;  %1848 = vmatprep.mubr.f32.mxu1 %v3199_v11  ;;  %v2927_v55 = vpack.c.bf16 %v1477_v53, %v1469_v5  ;;  %v1517_v32 = vld [vmem:[#allocation5 + $0x2e8] sm:$0xff]  ;;  %v1537_v5 = vld [vmem:[#allocation7 + $0xf8] sm:$0xff]  ;;  %v1530_v53 = vld [vmem:[#allocation7 + $0xc0] sm:$0xff]  ;;  %v2104_v35 = vpop.permute.xlu1 %2103 }
 0x7bf   :  { %2916 = vmatprep.subr.bf16.mxu1 %v2915_v34  ;;  %v1525_v29 = vld [vmem:[#allocation5 + $0x328] sm:$0xff]  ;;  %v1519_v34 = vld [vmem:[#allocation5 + $0x2f8] sm:$0xff] }
 0x7c0   :  { %2928 = vmatprep.subr.bf16.mxu0 %v2927_v55 }
 0x7c2   :  { %2918 = vmatpush1.bf16.msra.mxu1 %v2917_v45  ;;  %v2939_v45 = vpack.c.bf16 %v1525_v29, %v1517_v32 }
 0x7c3   :  { %2920 = vmatprep.subr.bf16.mxu1 %v2919_v38  ;;  %v2955_v38 = vpack.c.bf16 %v1527_v40, %v1519_v34 }
 0x7c6   :  { %2922 = vmatpush1.bf16.msra.mxu1 %v2921_v49  ;;  %v1529_v49 = vld [vmem:[#allocation7 + $0xb8] sm:$0xff] }
 0x7c7   :  { %2924 = vmatprep.subr.bf16.mxu1 %v2923_v43  ;;  %v2941_v43 = vpack.c.bf16 %v1524_v47, %v1516_v42  ;;  %v2959_v51 = vpack.c.bf16 %v1529_v49, %v1528_v4 }
 0x7ca   :  { %2926 = vmatpush1.bf16.msra.mxu1 %v2925_v52  ;;  %v1536_v52 = vld [vmem:[#allocation7 + $0xf0] sm:$0xff] }
 0x7cb   :  { %2944 = vmatprep.subr.bf16.mxu1 %v2943_v57  ;;  %v2976_v55 = vpack.c.bf16 %v1537_v5, %v1536_v52  ;;  %v2963_v57 = vpack.c.bf16 %v1531_v54, %v1530_v53  ;;  %v2018_v5 = vpop.permute.xlu0 %2017 }
 0x7cf   :  { %v2140_v54 = vpop.permute.xlu0 %2139 }
 0x890   :  { %v3417_v15 = vpop.f32.mrb[14].mxu1 }
 0x891   :  { %v3419_v18 = vpop.f32.mrb[15].mxu1 }
 0x892   :  { %2580 = vmatmul.mubr.msk.f32.vlgmr.msra.gmra.mrb[20].mxu0 %vm1434_vm6, %v3419_v18  ;;  %2582 = vmatmul.mubr.msk.f32.vlgmr.msra.gmra.mrb[16].mxu1 %vm1434_vm6, %v3419_v18 }
 0x893   :  { %2930 = vmatpush1.bf16.msra.mxu0 %v2929_v26  ;;  %2946 = vmatpush1.bf16.msra.mxu1 %v2945_v13  ;;  %v2335_v26 = vld [vmem:[#allocation7 + $0x140] sm:$0xff]  ;;  %v2336_v13 = vld [vmem:[#allocation7 + $0x148] sm:$0xff] }
 0x894   :  { %1777 = vmatprep.mubr.f32.mxu0 %v3199_v11  ;;  %1854 = vmatprep.mubr.f32.mxu1 %v3199_v11  ;;  %v2991_v14 = vpack.c.bf16 %v2335_v26, %v2334_v25  ;;  %v2994_v23 = vpack.c.bf16 %v2337_v21, %v2336_v13 }
 0x895   :  { %2932 = vmatprep.subr.bf16.mxu0 %v2931_v24  ;;  %2948 = vmatprep.subr.bf16.mxu1 %v2947_v19  ;;  %v2342_v19 = vld [vmem:[#allocation7 + $0x178] sm:$0xff] }
 0x896   :  { %2581 = vmatmul.mubr.msk.f32.gmra.mrb[22].mxu0 %vm1434_vm6, %v3417_v15  ;;  %2583 = vmatmul.mubr.msk.f32.gmra.mrb[18].mxu1 %vm1434_vm6, %v3417_v15  ;;  %v3003_v3 = vpack.c.bf16 %v2343_v22, %v2342_v19 }
 0x897   :  { %2934 = vmatpush1.bf16.msra.mxu0 %v2933_v28  ;;  %2950 = vmatpush1.bf16.msra.mxu1 %v2949_v31  ;;  %v2345_v28 = vld [vmem:[#allocation7 + $0x190] sm:$0xff] }
 0x898   :  { %2936 = vmatprep.subr.bf16.mxu0 %v2935_v33  ;;  %2952 = vmatprep.subr.bf16.mxu1 %v2951_v36  ;;  %v3006_v31 = vpack.c.bf16 %v2345_v28, %v2344_v30  ;;  %v2108_v33 = vpop.permute.xlu1 %2107 }
 0x899   :  { %1925 = vmatprep.mubr.f32.mxu0 %v3199_v11  ;;  %2002 = vmatprep.mubr.f32.mxu1 %v3199_v11 }
 0x89b   :  { %2938 = vmatpush1.bf16.msra.mxu0 %v2937_v41  ;;  %2954 = vmatpush1.bf16.msra.mxu1 %v2953_v44 }
 0x89c   :  { %2940 = vmatprep.subr.bf16.mxu0 %v2939_v45  ;;  %2956 = vmatprep.subr.bf16.mxu1 %v2955_v38  ;;  %v2116_v36 = vpop.permute.xlu1 %2115 }
 0x89f   :  { %2942 = vmatpush1.bf16.msra.mxu0 %v2941_v43  ;;  %2958 = vmatpush1.bf16.msra.mxu1 %v2957_v50 }
 0x8a0   :  { %2960 = vmatprep.subr.bf16.mxu0 %v2959_v51  ;;  %2975 = vmatprep.subr.bf16.mxu1 %v3208_v61  ;;  %v2120_v37 = vpop.permute.xlu1 %2119 }
 0x8a2   :  { %2584 = vmatmul.mubr.msk.f32.vlgmr.msra.gmra.mrb[24].mxu0 %vm1434_vm6, %v3419_v18  ;;  %2586 = vmatmul.mubr.msk.f32.vlgmr.msra.gmra.mrb[20].mxu1 %vm1434_vm6, %v3419_v18 }
 0x8a3   :  { %2962 = vmatpush3.bf16.msra.mxu0 %v2959_v51  ;;  %2977 = vmatpush3.bf16.msra.mxu1 %v2976_v55 }
 0x8a4   :  { %1931 = vmatprep.mubr.f32.mxu0 %v3199_v11  ;;  %2008 = vmatprep.mubr.f32.mxu1 %v3199_v11  ;;  %v2128_v45 = vpop.permute.xlu1 %2127 }
 0x8a5   :  { %2964 = vmatprep.subr.bf16.mxu0 %v2963_v57  ;;  %2978 = vmatprep.subr.bf16.mxu1 %v3208_v61 }
 0x8a6   :  { %2585 = vmatmul.mubr.msk.f32.gmra.mrb[26].mxu0 %vm1434_vm6, %v3417_v15  ;;  %2587 = vmatmul.mubr.msk.f32.gmra.mrb[22].mxu1 %vm1434_vm6, %v3417_v15 }
 0x8a7   :  { %2966 = vmatpush3.bf16.msra.mxu0 %v2963_v57  ;;  %2776 = vmatprep.mubr.msk.f32.mxu0 %vm1434_vm6, %v3419_v18  ;;  %v2341_v18 = vld [vmem:[#allocation7 + $0x170] sm:$0xff] }
 0x8a8   :  { %2980 = vmatpush3.bf16.msra.mxu1 %v2979_v62  ;;  %2968 = vmatprep.subr.bf16.mxu0 %v2967_v2  ;;  %v2132_v38 = vpop.permute.xlu1 %2131 }
 0x8a9   :  { %2981 = vmatprep.subr.bf16.mxu1 %v3208_v61  ;;  %2795 = vmatprep.mubr.msk.f32.mxu1 %vm3209_vm3, %v3199_v11 }
 0x8ab   :  { %2970 = vmatpush3.bf16.msra.mxu0 %v2967_v2 }
 0x8ac   :  { %2983 = vmatpush3.bf16.msra.mxu1 %v2982_v6  ;;  %2972 = vmatprep.subr.bf16.mxu0 %v2971_v9  ;;  %v2144_v49 = vpop.permute.xlu1 %2143 }
 0x8ad   :  { %2984 = vmatprep.subr.bf16.mxu1 %v3208_v61 }
 0x8af   :  { %2974 = vmatpush3.bf16.msra.mxu0 %v2971_v9 }
 0x8b0   :  { %2986 = vmatpush3.bf16.msra.mxu1 %v2985_v12  ;;  %2987 = vmatprep.subr.bf16.mxu0 %v3208_v61  ;;  %v2152_v53 = vpop.permute.xlu1 %2151 }
 0x8b1   :  { %2990 = vmatprep.subr.bf16.mxu1 %v3208_v61 }
 0x8b2   :  { %2777 = vmatmul.mubr.msk.f32.vlgmr.msra.gmra.mrb[28].mxu0 %vm1434_vm6, %v3417_v15  ;;  %v2339_v15 = vld [vmem:[#allocation7 + $0x160] sm:$0xff] }
 0x8b3   :  { %2796 = vmatmul.mubr.msk.f32.vlgmr.msra.gmra.mrb[24].mxu1 %vm1434_vm6, %v3400_v27  ;;  %2802 = vmatprep.mubr.msk.f32.mxu0 %vm3209_vm3, %v3199_v11  ;;  %v2997_v17 = vpack.c.bf16 %v2339_v15, %v2338_v16  ;;  %v2340_v27 = vld [vmem:[#allocation7 + $0x168] sm:$0xff] }
 0x8b4   :  { %2837 = vmatprep.mubr.msk.f32.mxu1 %vm3209_vm3, %v3199_v11  ;;  %2992 = vmatpush3.bf16.msra.mxu1 %v2991_v14  ;;  %v3000_v24 = vpack.c.bf16 %v2341_v18, %v2340_v27  ;;  %v2164_v56 = vpop.permute.xlu1 %2163  ;;  %v2156_v14 = vpop.permute.xlu0 %2155 }
 0x8b5   :  { %2993 = vmatprep.subr.bf16.mxu1 %v3208_v61 }
 0x8b8   :  { %2995 = vmatpush3.bf16.msra.mxu1 %v2994_v23  ;;  %v2168_v25 = vpop.permute.xlu1 %2167 }
 0x8b9   :  { %2996 = vmatprep.subr.bf16.mxu1 %v3208_v61 }
 0x8bc   :  { %2998 = vmatpush3.bf16.msra.mxu1 %v2997_v17 }
 0x8bd   :  { %2999 = vmatprep.subr.bf16.mxu1 %v3208_v61 }
 0x8c0   :  { %3001 = vmatpush3.bf16.msra.mxu1 %v3000_v24 }
 0x8c1   :  { %3002 = vmatprep.subr.bf16.mxu1 %v3208_v61 }
 0x8c4   :  { %3004 = vmatpush3.bf16.msra.mxu1 %v3003_v3  ;;  %v2180_v3 = vpop.permute.xlu1 %2179 }
 0x8c5   :  { %3005 = vmatprep.subr.bf16.mxu1 %v3208_v61 }
 0x8c8   :  { %3007 = vmatpush3.bf16.msra.mxu1 %v3006_v31  ;;  %v2176_v31 = vpop.permute.xlu0 %2175 }
 0x8c9   :  { %3008 = vmatprep.subr.bf16.mxu1 %v3208_v61 }
 0x965   :  { %v1773_v39 = vpop.f32.mrb[20].mxu0  ;;  %v1850_v32 = vpop.f32.mrb[16].mxu1 }
 0x966   :  { %v1775_v29 = vpop.f32.mrb[21].mxu0  ;;  %v1852_v34 = vpop.f32.mrb[17].mxu1  ;;  %v2025_v57 = vmul.f32 %v2018_v5, %v1773_v39  ;;  %v2122_v9 = vmul.f32 %v2116_v36, %v1850_v32 }
 0x967   :  { %v2110_v63 = vmul.f32 %v2104_v35, %v1775_v29  ;;  %v2134_v26 = vmul.f32 %v2128_v45, %v1852_v34  ;;  %v3095_v29 = vld [vmem:[#allocation2 + $0x28] sm:$0xff] }
 0x968   :  { %v2346_v34 = vld [vmem:[#allocation7 + $0x198] sm:$0xff] }
 0x969   :  { %v1779_v40 = vpop.f32.mrb[22].mxu0  ;;  %v1856_v41 = vpop.f32.mrb[18].mxu1 }
 0x96a   :  { %v1781_v44 = vpop.f32.mrb[23].mxu0  ;;  %v1858_v42 = vpop.f32.mrb[19].mxu1  ;;  %v2026_v55 = vmul.f32 %v2023_v1, %v1779_v40  ;;  %v2123_v8 = vmul.f32 %v2120_v37, %v1856_v41  ;;  %v2347_v40 = vld [vmem:[#allocation7 + $0x1a0] sm:$0xff] }
 0x96b   :  { %v2111_v59 = vmul.f32 %v2108_v33, %v1781_v44  ;;  %v2135_v10 = vmul.f32 %v2132_v38, %v1858_v42  ;;  %v3009_v41 = vpack.c.bf16 %v2347_v40, %v2346_v34  ;;  %v2348_v44 = vld [vmem:[#allocation7 + $0x1a8] sm:$0xff]  ;;  %v2349_v42 = vld [vmem:[#allocation7 + $0x1b0] sm:$0xff]  ;;  %v2351_v38 = vld [vmem:[#allocation7 + $0x1c0] sm:$0xff] }
 0x96c   :  { %v3012_v45 = vpack.c.bf16 %v2349_v42, %v2348_v44 }
 0x96d   :  { %3010 = vmatpush3.bf16.msra.mxu1 %v3009_v41 }
 0x96e   :  { %3011 = vmatprep.subr.bf16.mxu1 %v3208_v61 }
 0x971   :  { %3013 = vmatpush3.bf16.msra.mxu1 %v3012_v45 }
 0x975   :  { %v1927_v47 = vpop.f32.mrb[24].mxu0  ;;  %v2004_v46 = vpop.f32.mrb[20].mxu1 }
 0x976   :  { %v1929_v48 = vpop.f32.mrb[25].mxu0  ;;  %v2006_v4 = vpop.f32.mrb[21].mxu1  ;;  %v2146_v16 = vmul.f32 %v2140_v54, %v1927_v47  ;;  %v2170_v30 = vmul.f32 %v2164_v56, %v2004_v46  ;;  %v2352_v47 = vld [vmem:[#allocation7 + $0x1c8] sm:$0xff]  ;;  %v2353_v46 = vld [vmem:[#allocation7 + $0x1d0] sm:$0xff] }
 0x977   :  { %v2158_v18 = vmul.f32 %v2152_v53, %v1929_v48  ;;  %v2182_v33 = vmul.f32 %v2176_v31, %v2006_v4  ;;  %v3015_v48 = vpack.c.bf16 %v2352_v47, %v2351_v38  ;;  %v2354_v4 = vld [vmem:[#allocation7 + $0x1d8] sm:$0xff]  ;;  %v2357_v56 = vld [vmem:[#allocation7 + $0x1f0] sm:$0xff] }
 0x979   :  { %v1933_v43 = vpop.f32.mrb[26].mxu0  ;;  %v2010_v50 = vpop.f32.mrb[22].mxu1 }
 0x97a   :  { %v1935_v51 = vpop.f32.mrb[27].mxu0  ;;  %v2012_v52 = vpop.f32.mrb[23].mxu1  ;;  %v2147_v21 = vmul.f32 %v2144_v49, %v1933_v43  ;;  %v2171_v19 = vmul.f32 %v2168_v25, %v2010_v50  ;;  %v3018_v49 = vpack.c.bf16 %v2354_v4, %v2353_v46  ;;  %v2356_v43 = vld [vmem:[#allocation7 + $0x1e8] sm:$0xff] }
 0x97b   :  { %v2159_v17 = vmul.f32 %v2156_v14, %v1935_v51  ;;  %v2183_v1 = vmul.f32 %v2180_v3, %v2012_v52  ;;  %v2592_v51 = vld [vmem:[#allocation7 + $0x130] ss:$0 sm:$0xff] }
 0x985   :  { %v2778_v58 = vpop.f32.mrb[28].mxu0 }
 0x986   :  { %v2099_v60 = vadd.f32 %v2778_v58, %v2026_v55  ;;  %v3467_v62 = vpop.f32.mrb[24].mxu1  ;;  %v2093_v2 = vpop.f32.mrb[29].mxu0 }
 0x987   :  { %v2094_v0 = vadd.f32 %v2093_v2, %v2025_v57  ;;  %v2797_v7 = vpop.f32.mrb[25].mxu1  ;;  %v2358_v57 = vld [vmem:[#allocation7 + $0x1f8] sm:$0xff] }
 0x988   :  { %v2113_v6 = vadd.f32 %v2111_v59, %v2099_v60  ;;  %v3024_v58 = vpack.c.bf16 %v2358_v57, %v2357_v56  ;;  %v2593_v59 = vld [vmem:[#allocation7 + $0x1b8] ss:$0 sm:$0xff] }
 0x989   :  { %v2112_v20 = vadd.f32 %v2110_v63, %v2094_v0 }
 0x98a   :  { %v2125_v12 = vadd.f32 %v2123_v8, %v2113_v6 }
 0x98b   :  { %v2124_v13 = vadd.f32 %v2122_v9, %v2112_v20 }
 0x98c   :  { %v2137_v23 = vadd.f32 %v2135_v10, %v2125_v12 }
 0x98d   :  { %v2136_v15 = vadd.f32 %v2134_v26, %v2124_v13 }
 0x98e   :  { %v2149_v27 = vadd.f32 %v2147_v21, %v2137_v23 }
 0x98f   :  { %v2148_v24 = vadd.f32 %v2146_v16, %v2136_v15 }
 0x990   :  { %v2161_v22 = vadd.f32 %v2159_v17, %v2149_v27 }
 0x991   :  { %v2160_v28 = vadd.f32 %v2158_v18, %v2148_v24 }
 0x992   :  { %v2173_v35 = vadd.f32 %v2171_v19, %v2161_v22 }
 0x993   :  { %v2172_v36 = vadd.f32 %v2170_v30, %v2160_v28 }
 0x994   :  { %v2185_v37 = vadd.f32 %v2183_v1, %v2173_v35 }
 0x995   :  { %v2184_v39 = vadd.f32 %v2182_v33, %v2172_v36 }
 0x997   :  { %v2988_v32 = vpack.c.bf16 %v2185_v37, %v2184_v39 }
 0x999   :  { %2989 = vmatpush3.bf16.msra.mxu0 %v2988_v32 }
 0x99a   :  { %3014 = vmatprep.subr.bf16.mxu0 %v3208_v61 }
 0x99c   :  { %2803 = vmatmul.mubr.msk.f32.vlgmr.msra.gmra.mrb[30].mxu0 %vm627_vm4, %v3095_v29 }
 0x99d   :  { %2856 = vmatprep.mubr.msk.f32.mxu0 %vm3209_vm3, %v3199_v11  ;;  %3016 = vmatpush3.bf16.msra.mxu0 %v3015_v48  ;;  %v2355_v11 = vld [vmem:[#allocation7 + $0x1e0] sm:$0xff] }
 0x99e   :  { %3017 = vmatprep.subr.bf16.mxu0 %v3208_v61  ;;  %v3021_v50 = vpack.c.bf16 %v2356_v43, %v2355_v11 }
 0x9a1   :  { %3019 = vmatpush3.bf16.msra.mxu0 %v3018_v49 }
 0x9a2   :  { %3020 = vmatprep.subr.bf16.mxu0 %v3208_v61 }
 0x9a5   :  { %3022 = vmatpush3.bf16.msra.mxu0 %v3021_v50 }
 0x9a6   :  { %3023 = vmatprep.subr.bf16.mxu0 %v3208_v61  ;;  %v2594_v61 = vld [vmem:[#allocation7 + $0x200] ss:$0 sm:$0xff] }
 0x9a9   :  { %3025 = vmatpush3.bf16.msra.mxu0 %v3024_v58 }
 0xa6f   :  { %v2325_v52 = vpop.f32.mrb[30].mxu0 }
 0xa70   :  { %v2326_v5 = vadd.f32 %v2325_v52, %v3467_v62  ;;  %v2804_v53 = vpop.f32.mrb[31].mxu0 }
 0xa72   :  { %v2333_v54 = vadd.f32 %v2592_v51, %v2326_v5 }
 0xa74   :  { %v2360_v55 = vmax.f32 %v2333_v54, 0.0  ;;  %2523 = vst [vmem:[#allocation8] sm:$0xff] %v2333_v54 }
 0xa76   :  { %2838 = vmatmul.mubr.f32.vlgmr.msra.gmra.mrb[26].mxu1 %v2360_v55 }
 0xb49   :  { %v2431_v60 = vpop.f32.mrb[26].mxu1 }
 0xb4a   :  { %v2432_v2 = vadd.f32 %v2593_v59, %v2431_v60  ;;  %v2839_v63 = vpop.f32.mrb[27].mxu1 }
 0xb4c   :  { %2857 = vmatmul.mubr.msk.f32.vlgmr.msra.gmra.mrb[32].mxu0 %vm1434_vm6, %v2432_v2 }
 0xc1f   :  { %v2508_v0 = vpop.f32.mrb[32].mxu0 }
 0xc20   :  { %v2509_v7 = vadd.f32 %v2594_v61, %v2508_v0  ;;  %v2858_v8 = vpop.f32.mrb[33].mxu0 }
 0xc22   :  { %2512 = vmax.xlane.f32.xlu1 %v2509_v7 }
 0xcaf   :  { %v2513_v62 = vpop.xlane.xlu1 %2512 }
 0xcb0   :  { %v2514_v6 = vsub.f32 %v2509_v7, %v2513_v62 }
 0xcb2   :  { %v2515_v9 = vmul.f32 1.442695, %v2514_v6 }
 0xcb4   :  { %3091 = vpow2.f32 %v2515_v9 }
 0xcbe   :  { %v3092_v20 = vpop.eup %3091 }
 0xcbf   :  { %2517 = vadd.xlane.f32.xlu0 %v3092_v20 }
 0xd4c   :  { %v2518_v10 = vpop.xlane.xlu0 %2517 }
 0xd4d   :  { %3093 = vlog2.f32 %v2518_v10 }
 0xd57   :  { %v3094_v12 = vpop.eup %3093 }
 0xd58   :  { %v2520_v25 = vmul.f32 0.6931472, %v3094_v12 }
 0xd5a   :  { %v2521_v26 = vadd.f32 %v2520_v25, %v2513_v62 }
 0xd5c   :  { %v2522_v13 = vsub.f32 %v2509_v7, %v2521_v26 }
 0xd5e   :  { %2524 = vst [vmem:[#allocation8 + $0x8] sm:$0xff] %v2522_v13 }
 0xd5f   :  { %3173 = shalt.err (!%p3170_p0)
}
 0xd60   :  { %s3174_s29 = scalar_lea.hbm %s3494_s3, 256 }
 0xd61   :  { %p3175_p1 = scmp.ne.s32.totalorder %s3494_s3, %s3174_s29  ;;  %p3178_p2 = scmp.lt.u32.totalorder %s3174_s29, %s3494_s3 }
 0xd63   :  { %p3180_p3 = pnand %p3178_p2, %p3175_p1 }
 0xd65   :  { %3183 = shalt.err (!%p3180_p3)
}
 0xd66   :  { %2534 = dma.vmem_to_hbm [thread:$0]  %s2532_s25, 256, %s3494_s3, [#allocation4]  }
 0xd67   :  { %3188 = dma.done.wait [#allocation4], 256  }
 0xd68   :  { %3189 = vsyncadd [#allocation4], 4294967040 }
 0xd69   :  { %2538 = vsyncpa [#allocation3], 1 }
 0xd6a   :  { %2539 = vsyncpa [#allocation6], 1 }
 0xd6b   :  { %2540 = vsyncpa [#allocation4], 1 }

</bundles_post_ra>
